<compile_context>
chip_gen: v7x
topology: tpu7x:2x2x1
jax: 0.10.0
libtpu: 0.0.40
codegen_flags: <defaults>
</compile_context>

<pallas_src>
import math
from functools import lru_cache, partial

import numpy as np
import jax
import jax.numpy as jnp
from jax.experimental import pallas as pl
from jax.experimental.pallas import tpu as pltpu

_CPAD = 256   # channel dim padded 245 -> 256: two full 128-lane registers
_SUB = 8      # sublane quantum; pixel-row counts are padded to multiples of this


def _round_up(x, m):
    return (x + m - 1) // m * m


# ----------------------------------------------------------------------------
# Build-time constant matrices (numpy, cached per batch-block / shapes)
# ----------------------------------------------------------------------------
def _bilinear_matrix(in_size, out_size):
    # PyTorch bilinear, align_corners=False. Rows sum to 1.
    scale = in_size / out_size
    o = np.arange(out_size, dtype=np.float64)
    src = np.clip((o + 0.5) * scale - 0.5, 0.0, in_size - 1)
    lo = np.floor(src).astype(np.int64)
    hi = np.minimum(lo + 1, in_size - 1)
    frac = src - lo
    A = np.zeros((out_size, in_size), dtype=np.float32)
    np.add.at(A, (np.arange(out_size), lo), (1.0 - frac).astype(np.float32))
    np.add.at(A, (np.arange(out_size), hi), frac.astype(np.float32))
    return A


def _resize_interior_matrix(in_h, in_w, out_h, out_w):
    # Resize matrix for the padding=1-grown (in_h+2, in_w+2) map, restricted to its
    # interior columns.  The ring columns only ever carry the conv bias and every
    # row of the full resize matrix sums to 1, so the ring collapses to "+bias"
    # (handled once via the pre-summed bias row).
    pad_h, pad_w = in_h + 2, in_w + 2
    A_h = _bilinear_matrix(pad_h, out_h)
    A_w = _bilinear_matrix(pad_w, out_w)
    R = np.kron(A_h, A_w)                                    # (out_h*out_w, pad_h*pad_w)
    cols = [(i + 1) * pad_w + (j + 1) for i in range(in_h) for j in range(in_w)]
    return R[:, cols].astype(np.float32)                     # (out_h*out_w, in_h*in_w)


def _interior_scatter_matrix(in_h, in_w):
    # 0/1 matrix scattering an (in_h, in_w) map into the interior of the
    # padding=1-grown (in_h+2, in_w+2) map (ring rows all-zero -> ring == bias).
    out_h, out_w = in_h + 2, in_w + 2
    P = np.zeros((out_h * out_w, in_h * in_w), dtype=np.float32)
    for i in range(in_h):
        for j in range(in_w):
            P[(i + 1) * out_w + (j + 1), i * in_w + j] = 1.0
    return P


@lru_cache(maxsize=None)
def _stage2_constants(b_blk, h4, w4, h5, w5, out_h, out_w):
    """Block-diagonal (batched) constants, rows/cols padded to sublane multiples."""
    assert (h4 + 2, w4 + 2) == (out_h, out_w), "conv4 pad ring must give output size"
    m4, m5, mo = h4 * w4, h5 * w5, out_h * out_w
    m4p, m5p, mop = _round_up(m4, _SUB), _round_up(m5, _SUB), _round_up(mo, _SUB)

    p4 = np.zeros((mop, m4p), np.float32)
    p4[:mo, :m4] = _interior_scatter_matrix(h4, w4)
    r = np.zeros((mop, m5p), np.float32)
    r[:mo, :m5] = _resize_interior_matrix(h5, w5, out_h, out_w)
    pool = np.zeros((1, m5p), np.float32)
    pool[0, :m5] = 1.0 / m5                                   # AvgPool2d over all pixels

    eye = np.eye(b_blk, dtype=np.float32)
    return (np.kron(eye, pool),                               # (B, B*m5p)
            np.kron(eye, p4),                                 # (B*mop, B*m4p)
            np.kron(eye, r))                                  # (B*mop, B*m5p)


# ----------------------------------------------------------------------------
# Fused Pallas kernel (one batch block of B samples per grid step)
# ----------------------------------------------------------------------------
def _make_cem_kernel(b_blk, m4p, m5p, mop):
    def kernel(c4_ref, c5_ref, w4_ref, w5_ref, wg_ref, bias_ref,
               pool_ref, p4_ref, r_ref, o_ref):
        f32 = jnp.float32
        # Flatten the batch block into the sublane (matmul-M) dimension; all row
        # counts are multiples of 8, so these reshapes are tile-aligned no-ops.
        c4 = c4_ref[...].reshape(b_blk * m4p, _CPAD)          # (B*64,  256)
        c5 = c5_ref[...].reshape(b_blk * m5p, _CPAD)          # (B*104, 256)

        # Stage 1 — the 1x1 convs as channel matmuls over the whole block.
        c4w = jnp.dot(c4, w4_ref[...], preferred_element_type=f32)    # (B*64,  256)
        c5w = jnp.dot(c5, w5_ref[...], preferred_element_type=f32)    # (B*104, 256)

        # Global branch — AvgPool2d as a tiny block-diagonal pooling matmul, then
        # conv_glb; the pre-summed biases of all three convs ride along here.
        g = jnp.dot(pool_ref[...], c5, preferred_element_type=f32)    # (B, 256)
        g = jnp.dot(g, wg_ref[...], preferred_element_type=f32) + bias_ref[...]

        # Stage 2 — conv4's padding=1 ring scatter and the folded
        # (pad ring + 12x12 -> 10x10 bilinear) resize, each as ONE batched matmul
        # against a block-diagonal constant (no 12x12 intermediate, no per-sample
        # loop, one MXU sequence per branch for the whole block).
        up4 = jnp.dot(p4_ref[...], c4w, preferred_element_type=f32)   # (B*104, 256)
        up5 = jnp.dot(r_ref[...], c5w, preferred_element_type=f32)    # (B*104, 256)

        out = (up4 + up5).reshape(b_blk, mop, _CPAD) + g[:, None, :]
        o_ref[...] = out                                       # lane-dense, unmasked vst
    return kernel


# ----------------------------------------------------------------------------
# One-time parameter preparation (hoisted out of the per-call path)
# ----------------------------------------------------------------------------
def prepare_cem_params(params):
    """Transpose/zero-pad the 1x1-conv weights to (256,256) 'row @ W' form and
    pre-sum the three biases into one (1,256) row: the conv padding=1 ring equals
    the bias and the bilinear rows sum to 1, so each bias adds exactly once to
    every output pixel."""
    def pad_w(w):
        co, ci = w.shape
        return jnp.pad(w.T.astype(jnp.float32), ((0, _CPAD - ci), (0, _CPAD - co)))

    bias = (params["b4"] + params["b5"] + params["bg"]).astype(jnp.float32)
    bias = jnp.pad(bias, (0, _CPAD - bias.shape[0])).reshape(1, _CPAD)
    return {"w4p": pad_w(params["w4"]), "w5p": pad_w(params["w5"]),
            "wgp": pad_w(params["wg"]), "bias": bias}


def _pick_batch_block(n, max_blk=4):
    # Largest divisor of n <= max_blk, preferring >= 2 grid steps so both v7x
    # TensorCores get work on the "parallel" grid axis.  B=4 fills v6e/v7x's
    # 256-row MXU on the c4 branch (B*64 rows); B=2 fills v5e's 128 rows.
    if n <= 1:
        return 1
    divs = [b for b in range(1, min(max_blk, n) + 1) if n % b == 0]
    multi = [b for b in divs if n // b >= 2]
    return max(multi) if multi else max(divs)


# ----------------------------------------------------------------------------
# Forward (jitted: layout glue + constants + pallas_call fuse into one executable)
# ----------------------------------------------------------------------------
@partial(jax.jit, static_argnames=("b_blk",))
def _cem_forward_jit(c4, c5, w4p, w5p, wgp, bias, *, b_blk):
    n, ch, h4, w4 = c4.shape
    _, _, h5, w5 = c5.shape
    out_h, out_w = h4 + 2, w4 + 2                 # module pins this to (10, 10)
    m4, m5, mo = h4 * w4, h5 * w5, out_h * out_w
    m4p, m5p, mop = _round_up(m4, _SUB), _round_up(m5, _SUB), _round_up(mo, _SUB)
    assert ch <= _CPAD and n % b_blk == 0

    # NCHW -> lane-dense channels-last rows, zero-padded to (rows_p, 256).
    # TODO(synk): preferred per review is a channels-last module boundary so even
    # this fused transpose/pad pass disappears; kept NCHW here to match the module.
    def to_rows(x, rows, rows_p):
        xb, xc = x.shape[0], x.shape[1]
        xr = jnp.transpose(x, (0, 2, 3, 1)).reshape(xb, rows, xc)
        return jnp.pad(xr, ((0, 0), (0, rows_p - rows), (0, _CPAD - xc)))

    c4r = to_rows(c4, m4, m4p)                    # (N, 64, 256)
    c5r = to_rows(c5, m5, m5p)                    # (N, 104, 256)

    pool_np, p4_np, r_np = _stage2_constants(b_blk, h4, w4, h5, w5, out_h, out_w)
    pool_blk, p4_blk, r_blk = (jnp.asarray(a) for a in (pool_np, p4_np, r_np))

    out = pl.pallas_call(
        _make_cem_kernel(b_blk, m4p, m5p, mop),
        out_shape=jax.ShapeDtypeStruct((n, mop, _CPAD), jnp.float32),
        grid=(n // b_blk,),
        in_specs=[
            pl.BlockSpec((b_blk, m4p, _CPAD), lambda i: (i, 0, 0)),
            pl.BlockSpec((b_blk, m5p, _CPAD), lambda i: (i, 0, 0)),
            pl.BlockSpec((_CPAD, _CPAD), lambda i: (0, 0)),            # w4
            pl.BlockSpec((_CPAD, _CPAD), lambda i: (0, 0)),            # w5
            pl.BlockSpec((_CPAD, _CPAD), lambda i: (0, 0)),            # wg
            pl.BlockSpec((1, _CPAD), lambda i: (0, 0)),                # summed bias
            pl.BlockSpec((b_blk, b_blk * m5p), lambda i: (0, 0)),      # pooling
            pl.BlockSpec((b_blk * mop, b_blk * m4p), lambda i: (0, 0)),  # P4 (blockdiag)
            pl.BlockSpec((b_blk * mop, b_blk * m5p), lambda i: (0, 0)),  # R_int (blockdiag)
        ],
        out_specs=pl.BlockSpec((b_blk, mop, _CPAD), lambda i: (i, 0, 0)),
        compiler_params=pltpu.CompilerParams(
            dimension_semantics=("parallel",)),
    )(c4r, c5r, w4p, w5p, wgp, bias, pool_blk, p4_blk, r_blk)

    # Lane-dense kernel output -> NCHW at the module boundary (fused under jit).
    out = out[:, :mo, :ch].reshape(n, out_h, out_w, ch)
    return jnp.transpose(out, (0, 3, 1, 2))


def cem_forward(prepared_params, inputs, *, max_batch_block=4):
    c4, c5 = inputs
    b_blk = _pick_batch_block(c4.shape[0], max_batch_block)
    return _cem_forward_jit(c4, c5, prepared_params["w4p"], prepared_params["w5p"],
                            prepared_params["wgp"], prepared_params["bias"],
                            b_blk=b_blk)


# TODO(synk): reference conv_glb has padding=1 which would yield a 3x3 map
# incompatible with the 10x10 add; implemented as the canonical CEM global 1x1
# branch (no padding) so the broadcast add is well-defined.
# TODO(synk): self.stage4 = stage(4) is undefined in the source and unused in
# forward(); omitted.
# TODO(synk): optional bf16 cast of weights/activations (review) skipped to keep
# f32 numerics; flip the dtypes in prepare_cem_params/to_rows if accuracy allows.


# ----------------------------------------------------------------------------
# Plain-JAX reference (independent of the Pallas layout/batching plumbing)
# ----------------------------------------------------------------------------
def cem_reference(params, inputs):
    c4, c5 = inputs
    n, ch, h4, w4 = c4.shape
    _, _, h5, w5 = c5.shape
    oh, ow = h4 + 2, w4 + 2
    hp = jax.lax.Precision.HIGHEST
    p4 = jnp.asarray(_interior_scatter_matrix(h4, w4))
    r = jnp.asarray(_resize_interior_matrix(h5, w5, oh, ow))
    c4f = c4.reshape(n, ch, h4 * w4)
    c5f = c5.reshape(n, ch, h5 * w5)
    c4w = jnp.einsum("oc,ncm->nom", params["w4"], c4f, precision=hp)
    c5w = jnp.einsum("oc,ncm->nom", params["w5"], c5f, precision=hp)
    up4 = jnp.einsum("pm,nom->nop", p4, c4w, precision=hp)
    up5 = jnp.einsum("pm,nom->nop", r, c5w, precision=hp)
    g = jnp.einsum("oc,nc->no", params["wg"], c5f.mean(axis=2), precision=hp)
    bias = params["b4"] + params["b5"] + params["bg"]
    out = up4 + up5 + (g + bias)[:, :, None]
    return out.reshape(n, ch, oh, ow)


# ----------------------------------------------------------------------------
# Deterministic setup + run
# ----------------------------------------------------------------------------
def init_conv(key, cin, cout):
    bound = 1.0 / math.sqrt(cin)
    kw, kb = jax.random.split(key)
    w = jax.random.uniform(kw, (cout, cin), jnp.float32, -bound, bound)
    b = jax.random.uniform(kb, (cout,), jnp.float32, -bound, bound)
    return w, b


if __name__ == "__main__":
    C, N = 245, 2
    key = jax.random.PRNGKey(0)
    k4, k5, kg, kx4, kx5 = jax.random.split(key, 5)

    w4, b4 = init_conv(k4, C, C)
    w5, b5 = init_conv(k5, C, C)
    wg, bg = init_conv(kg, C, C)
    params = {"w4": w4, "b4": b4, "w5": w5, "b5": b5, "wg": wg, "bg": bg}
    prepared = prepare_cem_params(params)          # one-time prep, outside hot path

    # c4: 8x8 so conv4 (pad=1) yields 10x10; c5: 10x10 (AvgPool2d(10) -> 1x1).
    c4 = jax.random.normal(kx4, (N, C, 8, 8), jnp.float32)
    c5 = jax.random.normal(kx5, (N, C, 10, 10), jnp.float32)

    out = jax.block_until_ready(cem_forward(prepared, (c4, c5)))
    assert out.shape == (N, C, 10, 10), out.shape
    assert bool(jnp.all(jnp.isfinite(out)))

    ref = cem_reference(params, (c4, c5))
    max_err = float(jnp.max(jnp.abs(out - ref)))
    assert max_err < 5e-2, f"mismatch vs reference: max abs err {max_err}"
    print("KERNEL_OK")
</pallas_src>

<mosaic_0001>
module attributes {stable_mosaic.version = 11 : i64} {
  func.func @kernel(%arg0: i32, %arg1: memref<1x64x256xf32, #tpu.memory_space<vmem>>, %arg2: memref<1x104x256xf32, #tpu.memory_space<vmem>>, %arg3: memref<256x256xf32, #tpu.memory_space<vmem>>, %arg4: memref<256x256xf32, #tpu.memory_space<vmem>>, %arg5: memref<256x256xf32, #tpu.memory_space<vmem>>, %arg6: memref<1x256xf32, #tpu.memory_space<vmem>>, %arg7: memref<1x104xf32, #tpu.memory_space<vmem>>, %arg8: memref<104x64xf32, #tpu.memory_space<vmem>>, %arg9: memref<104x104xf32, #tpu.memory_space<vmem>>, %arg10: memref<1x104x256xf32, #tpu.memory_space<vmem>>) attributes {dimension_semantics = [#tpu.dimension_semantics<parallel>], iteration_bounds = array<i64: 2>, scalar_prefetch = 0 : i64, scratch_operands = 0 : i64, tpu.core_type = #tpu.core_type<tc>, window_params = [{transform_indices = @transform_0, window_bounds = array<i64: 1, 64, 256>}, {transform_indices = @transform_1, window_bounds = array<i64: 1, 104, 256>}, {pipeline_mode = #tpu.pipeline_mode<synchronous>, transform_indices = @transform_2, window_bounds = array<i64: 256, 256>}, {pipeline_mode = #tpu.pipeline_mode<synchronous>, transform_indices = @transform_3, window_bounds = array<i64: 256, 256>}, {pipeline_mode = #tpu.pipeline_mode<synchronous>, transform_indices = @transform_4, window_bounds = array<i64: 256, 256>}, {pipeline_mode = #tpu.pipeline_mode<synchronous>, transform_indices = @transform_5, window_bounds = array<i64: 1, 256>}, {pipeline_mode = #tpu.pipeline_mode<synchronous>, transform_indices = @transform_6, window_bounds = array<i64: 1, 104>}, {pipeline_mode = #tpu.pipeline_mode<synchronous>, transform_indices = @transform_7, window_bounds = array<i64: 104, 64>}, {pipeline_mode = #tpu.pipeline_mode<synchronous>, transform_indices = @transform_8, window_bounds = array<i64: 104, 104>}, {transform_indices = @transform_9, window_bounds = array<i64: 1, 104, 256>}]} {
    %c0 = arith.constant 0 : index
    %c0_0 = arith.constant 0 : index
    %c0_1 = arith.constant 0 : index
    %0 = vector.load %arg1[%c0, %c0_0, %c0_1] : memref<1x64x256xf32, #tpu.memory_space<vmem>>, vector<1x64x256xf32>
    %1 = vector.shape_cast %0 : vector<1x64x256xf32> to vector<64x256xf32>
    %c0_2 = arith.constant 0 : index
    %c0_3 = arith.constant 0 : index
    %c0_4 = arith.constant 0 : index
    %2 = vector.load %arg2[%c0_2, %c0_3, %c0_4] : memref<1x104x256xf32, #tpu.memory_space<vmem>>, vector<1x104x256xf32>
    %3 = vector.shape_cast %2 : vector<1x104x256xf32> to vector<104x256xf32>
    %c0_5 = arith.constant 0 : index
    %c0_6 = arith.constant 0 : index
    %4 = vector.load %arg3[%c0_5, %c0_6] : memref<256x256xf32, #tpu.memory_space<vmem>>, vector<256x256xf32>
    %cst = arith.constant dense<0.000000e+00> : vector<64x256xf32>
    %5 = tpu.matmul %1, %4, %cst {dimension_numbers = #tpu.dot_dimension_numbers<[1], [0], [0], [1], [0, 0, 1, 1], [], []>} : vector<64x256xf32>, vector<256x256xf32>, vector<64x256xf32> -> vector<64x256xf32>
    %c0_7 = arith.constant 0 : index
    %c0_8 = arith.constant 0 : index
    %6 = vector.load %arg4[%c0_7, %c0_8] : memref<256x256xf32, #tpu.memory_space<vmem>>, vector<256x256xf32>
    %cst_9 = arith.constant dense<0.000000e+00> : vector<104x256xf32>
    %7 = tpu.matmul %3, %6, %cst_9 {dimension_numbers = #tpu.dot_dimension_numbers<[1], [0], [0], [1], [0, 0, 1, 1], [], []>} : vector<104x256xf32>, vector<256x256xf32>, vector<104x256xf32> -> vector<104x256xf32>
    %c0_10 = arith.constant 0 : index
    %c0_11 = arith.constant 0 : index
    %8 = vector.load %arg7[%c0_10, %c0_11] : memref<1x104xf32, #tpu.memory_space<vmem>>, vector<1x104xf32>
    %cst_12 = arith.constant dense<0.000000e+00> : vector<1x256xf32>
    %9 = tpu.matmul %8, %3, %cst_12 {dimension_numbers = #tpu.dot_dimension_numbers<[1], [0], [0], [1], [0, 0, 1, 1], [], []>} : vector<1x104xf32>, vector<104x256xf32>, vector<1x256xf32> -> vector<1x256xf32>
    %c0_13 = arith.constant 0 : index
    %c0_14 = arith.constant 0 : index
    %10 = vector.load %arg5[%c0_13, %c0_14] : memref<256x256xf32, #tpu.memory_space<vmem>>, vector<256x256xf32>
    %cst_15 = arith.constant dense<0.000000e+00> : vector<1x256xf32>
    %11 = tpu.matmul %9, %10, %cst_15 {dimension_numbers = #tpu.dot_dimension_numbers<[1], [0], [0], [1], [0, 0, 1, 1], [], []>} : vector<1x256xf32>, vector<256x256xf32>, vector<1x256xf32> -> vector<1x256xf32>
    %c0_16 = arith.constant 0 : index
    %c0_17 = arith.constant 0 : index
    %12 = vector.load %arg6[%c0_16, %c0_17] : memref<1x256xf32, #tpu.memory_space<vmem>>, vector<1x256xf32>
    %13 = arith.addf %11, %12 : vector<1x256xf32>
    %c0_18 = arith.constant 0 : index
    %c0_19 = arith.constant 0 : index
    %14 = vector.load %arg8[%c0_18, %c0_19] : memref<104x64xf32, #tpu.memory_space<vmem>>, vector<104x64xf32>
    %cst_20 = arith.constant dense<0.000000e+00> : vector<104x256xf32>
    %15 = tpu.matmul %14, %5, %cst_20 {dimension_numbers = #tpu.dot_dimension_numbers<[1], [0], [0], [1], [0, 0, 1, 1], [], []>} : vector<104x64xf32>, vector<64x256xf32>, vector<104x256xf32> -> vector<104x256xf32>
    %c0_21 = arith.constant 0 : index
    %c0_22 = arith.constant 0 : index
    %16 = vector.load %arg9[%c0_21, %c0_22] : memref<104x104xf32, #tpu.memory_space<vmem>>, vector<104x104xf32>
    %cst_23 = arith.constant dense<0.000000e+00> : vector<104x256xf32>
    %17 = tpu.matmul %16, %7, %cst_23 {dimension_numbers = #tpu.dot_dimension_numbers<[1], [0], [0], [1], [0, 0, 1, 1], [], []>} : vector<104x104xf32>, vector<104x256xf32>, vector<104x256xf32> -> vector<104x256xf32>
    %18 = arith.addf %15, %17 : vector<104x256xf32>
    %19 = vector.shape_cast %18 : vector<104x256xf32> to vector<1x104x256xf32>
    %20 = vector.shape_cast %13 : vector<1x256xf32> to vector<1x1x256xf32>
    %21 = vector.broadcast %20 : vector<1x1x256xf32> to vector<1x104x256xf32>
    %22 = arith.addf %19, %21 : vector<1x104x256xf32>
    %c0_24 = arith.constant 0 : index
    %c0_25 = arith.constant 0 : index
    %c0_26 = arith.constant 0 : index
    %23 = vector.load %arg10[%c0_24, %c0_25, %c0_26] : memref<1x104x256xf32, #tpu.memory_space<vmem>>, vector<1x104x256xf32>
    tpu.vector_store %arg10[%c0_24, %c0_25, %c0_26], %22 {strides = array<i32>} : memref<1x104x256xf32, #tpu.memory_space<vmem>>, vector<1x104x256xf32>,
    return
  }
  func.func @transform_0(%arg0: i32) -> (i32, i32, i32) {
    %c0_i32 = arith.constant 0 : i32
    %c0_i32_0 = arith.constant 0 : i32
    %c0_i32_1 = arith.constant 0 : i32
    return %arg0, %c0_i32, %c0_i32_0 : i32, i32, i32
  }
  func.func @transform_1(%arg0: i32) -> (i32, i32, i32) {
    %c0_i32 = arith.constant 0 : i32
    %c0_i32_0 = arith.constant 0 : i32
    %c0_i32_1 = arith.constant 0 : i32
    return %arg0, %c0_i32, %c0_i32_0 : i32, i32, i32
  }
  func.func @transform_2(%arg0: i32) -> (i32, i32) {
    %c0_i32 = arith.constant 0 : i32
    %c0_i32_0 = arith.constant 0 : i32
    %c0_i32_1 = arith.constant 0 : i32
    return %c0_i32, %c0_i32_0 : i32, i32
  }
  func.func @transform_3(%arg0: i32) -> (i32, i32) {
    %c0_i32 = arith.constant 0 : i32
    %c0_i32_0 = arith.constant 0 : i32
    %c0_i32_1 = arith.constant 0 : i32
    return %c0_i32, %c0_i32_0 : i32, i32
  }
  func.func @transform_4(%arg0: i32) -> (i32, i32) {
    %c0_i32 = arith.constant 0 : i32
    %c0_i32_0 = arith.constant 0 : i32
    %c0_i32_1 = arith.constant 0 : i32
    return %c0_i32, %c0_i32_0 : i32, i32
  }
  func.func @transform_5(%arg0: i32) -> (i32, i32) {
    %c0_i32 = arith.constant 0 : i32
    %c0_i32_0 = arith.constant 0 : i32
    %c0_i32_1 = arith.constant 0 : i32
    return %c0_i32, %c0_i32_0 : i32, i32
  }
  func.func @transform_6(%arg0: i32) -> (i32, i32) {
    %c0_i32 = arith.constant 0 : i32
    %c0_i32_0 = arith.constant 0 : i32
    %c0_i32_1 = arith.constant 0 : i32
    return %c0_i32, %c0_i32_0 : i32, i32
  }
  func.func @transform_7(%arg0: i32) -> (i32, i32) {
    %c0_i32 = arith.constant 0 : i32
    %c0_i32_0 = arith.constant 0 : i32
    %c0_i32_1 = arith.constant 0 : i32
    return %c0_i32, %c0_i32_0 : i32, i32
  }
  func.func @transform_8(%arg0: i32) -> (i32, i32) {
    %c0_i32 = arith.constant 0 : i32
    %c0_i32_0 = arith.constant 0 : i32
    %c0_i32_1 = arith.constant 0 : i32
    return %c0_i32, %c0_i32_0 : i32, i32
  }
  func.func @transform_9(%arg0: i32) -> (i32, i32, i32) {
    %c0_i32 = arith.constant 0 : i32
    %c0_i32_0 = arith.constant 0 : i32
    %c0_i32_1 = arith.constant 0 : i32
    return %arg0, %c0_i32, %c0_i32_0 : i32, i32, i32
  }
}

</mosaic_0001>

<bundles_post_ra>
// kernel: _cem_forward_jit.1
= control target key start
LH: loop header
LB: loop body
LE: loop exit
PB: predicated region body
PF: predicated region fallthrough
CT: control target
= control target key end

     0   :  { %s1918_s30 = smov 0   ;;  %s2878_s0 = inlined_call_operand.vmem [shape: f32[2,64,256], index: 0, kind: input, shape index: {}]   ;;  %s2879_s1 = inlined_call_operand.vmem [shape: f32[2,104,256], index: 1, kind: input, shape index: {}]   ;;  %s2880_s2 = inlined_call_operand.vmem [shape: f32[256,256], index: 2, kind: input, shape index: {}]   ;;  %s2881_s3 = inlined_call_operand.vmem [shape: f32[256,256], index: 3, kind: input, shape index: {}]   ;;  %s2882_s4 = inlined_call_operand.vmem [shape: f32[256,256], index: 4, kind: input, shape index: {}]   ;;  %s2883_s5 = inlined_call_operand.vmem [shape: f32[1,256], index: 5, kind: input, shape index: {}]   ;;  %s2884_s6 = inlined_call_operand.vmem [shape: f32[1,104], index: 6, kind: input, shape index: {}]   ;;  %s2885_s7 = inlined_call_operand.vmem [shape: f32[104,64], index: 7, kind: input, shape index: {}]   ;;  %s2886_s8 = inlined_call_operand.vmem [shape: f32[104,104], index: 8, kind: input, shape index: {}]   ;;  %s2887_s9 = inlined_call_operand.vmem [shape: f32[2,104,256], index: 9, kind: output, shape index: {}]  }
   0x1 LB: > { %s1520_s10 = sadd.s32 4294967295, %s1865_s30   ;;  %p1524_p0 = scmp.ge.s32.totalorder %s1865_s30, 1  ;;  %s1865_s30 = sphi %s1918_s30, %s19_s30  }
   0x2   : > { %p297_p1 = scmp.lt.s32.totalorder %s1865_s30, 3 }
   0x4   : > { %p298_p2 = pnand %p1524_p0, %p297_p1 }
   0x5   : > { %v396_v0 = vld [vmem:[%s2880_s2 + $0x8] sm:$0xff] (!%p298_p2)  ;;  %v398_v1 = vld [vmem:[%s2880_s2 + $0x18] sm:$0xff] (!%p298_p2)  ;;  %v395_v5 = vld [vmem:[%s2880_s2] sm:$0xff] (!%p298_p2)  ;;  %p2132_p3 = scmp.lt.s32.totalorder (!%p298_p2), %s1520_s10, 1  ;;  %vm780_vm0 = vcmask (!%p298_p2), 850944   ;;  %vm1210_vm1 = vcmask (!%p298_p2), 523264  }
   0x6   : > { %301 = sbr.rel (%p298_p2) target bundleno = 614 (0x266), region = 56  ;;  %v573_v2 = vld [vmem:[%s2881_s3 + $0x8] sm:$0xff] (!%p298_p2)  ;;  %v1559_v3 = vpack.c.bf16 (!%p298_p2), %v398_v1, %v396_v0  ;;  %v575_v4 = vld [vmem:[%s2881_s3 + $0x18] sm:$0xff] (!%p298_p2)  ;;  %v397_v6 = vld [vmem:[%s2880_s2 + $0x10] sm:$0xff] (!%p298_p2) }
   0x7   : > { %v1623_v7 = vpack.c.bf16 (!%p298_p2), %v575_v4, %v573_v2  ;;  %v1561_v8 = vpack.c.bf16 (!%p298_p2), %v397_v6, %v395_v5  ;;  %v572_v9 = vld [vmem:[%s2881_s3] sm:$0xff] (!%p298_p2)  ;;  %v574_v10 = vld [vmem:[%s2881_s3 + $0x10] sm:$0xff] (!%p298_p2)  ;;  %v400_v11 = vld [vmem:[%s2880_s2 + $0x28] sm:$0xff] (!%p298_p2) }
   0x8   : > { %1560 = vmatprep.subr.bf16.mxu0 (!%p298_p2), %v1559_v3  ;;  %v1625_v12 = vpack.c.bf16 (!%p298_p2), %v574_v10, %v572_v9  ;;  %v402_v13 = vld [vmem:[%s2880_s2 + $0x38] sm:$0xff] (!%p298_p2)  ;;  %v577_v14 = vld [vmem:[%s2881_s3 + $0x28] sm:$0xff] (!%p298_p2)  ;;  %v399_v18 = vld [vmem:[%s2880_s2 + $0x20] sm:$0xff] (!%p298_p2) }
   0x9   : > { %v579_v15 = vld [vmem:[%s2881_s3 + $0x38] sm:$0xff] (!%p298_p2)  ;;  %1624 = vmatprep.subr.bf16.mxu1 (!%p298_p2), %v1623_v7  ;;  %1562 = vmatpush1.bf16.msra.mxu0 (!%p298_p2), %v1561_v8  ;;  %v1563_v16 = vpack.c.bf16 (!%p298_p2), %v402_v13, %v400_v11  ;;  %v401_v19 = vld [vmem:[%s2880_s2 + $0x30] sm:$0xff] (!%p298_p2)  ;;  %v576_v20 = vld [vmem:[%s2881_s3 + $0x20] sm:$0xff] (!%p298_p2) }
   0xa   : > { %v1627_v17 = vpack.c.bf16 (!%p298_p2), %v579_v15, %v577_v14  ;;  %1626 = vmatpush1.bf16.msra.mxu1 (!%p298_p2), %v1625_v12  ;;  %v1565_v21 = vpack.c.bf16 (!%p298_p2), %v401_v19, %v399_v18  ;;  %v578_v22 = vld [vmem:[%s2881_s3 + $0x30] sm:$0xff] (!%p298_p2)  ;;  %v404_v23 = vld [vmem:[%s2880_s2 + $0x48] sm:$0xff] (!%p298_p2)  ;;  %v406_v24 = vld [vmem:[%s2880_s2 + $0x58] sm:$0xff] (!%p298_p2) }
   0xb   : > { %1564 = vmatprep.subr.bf16.mxu0 (!%p298_p2), %v1563_v16  ;;  %v1629_v25 = vpack.c.bf16 (!%p298_p2), %v578_v22, %v576_v20  ;;  %v1567_v26 = vpack.c.bf16 (!%p298_p2), %v406_v24, %v404_v23  ;;  %v581_v27 = vld [vmem:[%s2881_s3 + $0x48] sm:$0xff] (!%p298_p2)  ;;  %v583_v28 = vld [vmem:[%s2881_s3 + $0x58] sm:$0xff] (!%p298_p2)  ;;  %v403_v29 = vld [vmem:[%s2880_s2 + $0x40] sm:$0xff] (!%p298_p2) }
   0xc   : > { %1628 = vmatprep.subr.bf16.mxu1 (!%p298_p2), %v1627_v17  ;;  %v1631_v30 = vpack.c.bf16 (!%p298_p2), %v583_v28, %v581_v27  ;;  %v405_v31 = vld [vmem:[%s2880_s2 + $0x50] sm:$0xff] (!%p298_p2)  ;;  %v580_v32 = vld [vmem:[%s2881_s3 + $0x40] sm:$0xff] (!%p298_p2)  ;;  %v408_v35 = vld [vmem:[%s2880_s2 + $0x68] sm:$0xff] (!%p298_p2) }
   0xd   : > { %v582_v33 = vld [vmem:[%s2881_s3 + $0x50] sm:$0xff]  ;;  %1566 = vmatpush1.bf16.msra.mxu0 %v1565_v21  ;;  %v1569_v34 = vpack.c.bf16 %v405_v31, %v403_v29  ;;  %v410_v36 = vld [vmem:[%s2880_s2 + $0x78] sm:$0xff]  ;;  %v585_v37 = vld [vmem:[%s2881_s3 + $0x68] sm:$0xff]  ;;  %s2890_s10 = smov (!%p2132_p3, %s1520_s10), 1 }
   0xe   : > { %1630 = vmatpush1.bf16.msra.mxu1 %v1629_v25  ;;  %1568 = vmatprep.subr.bf16.mxu0 %v1567_v26  ;;  %v1633_v38 = vpack.c.bf16 %v582_v33, %v580_v32  ;;  %v1571_v39 = vpack.c.bf16 %v410_v36, %v408_v35  ;;  %v587_v40 = vld [vmem:[%s2881_s3 + $0x78] sm:$0xff]  ;;  %v407_v41 = vld [vmem:[%s2880_s2 + $0x60] sm:$0xff]  ;;  %v409_v42 = vld [vmem:[%s2880_s2 + $0x70] sm:$0xff]  ;;  %s1558_s28 = sshll.u32 %s2890_s10, 7  ;;  %s1849_s29 = smul.u32 208, %s2890_s10 }
   0xf   : > { %1632 = vmatprep.subr.bf16.mxu1 %v1631_v30  ;;  %v1635_v43 = vpack.c.bf16 %v587_v40, %v585_v37  ;;  %v584_v44 = vld [vmem:[%s2881_s3 + $0x60] sm:$0xff]  ;;  %v586_v45 = vld [vmem:[%s2881_s3 + $0x70] sm:$0xff]  ;;  %v412_v46 = vld [vmem:[%s2880_s2 + $0x88] sm:$0xff]  ;;  %v1573_v50 = vpack.c.bf16 %v409_v42, %v407_v41  ;;  %s2219_s12 = scalar_lea.vmem %s2878_s0, %s1558_s28 }
  0x10   : > { %v414_v47 = vld [vmem:[%s2880_s2 + $0x98] sm:$0xff]  ;;  %v589_v48 = vld [vmem:[%s2881_s3 + $0x88] sm:$0xff]  ;;  %v1637_v51 = vpack.c.bf16 %v586_v45, %v584_v44  ;;  %v411_v53 = vld [vmem:[%s2880_s2 + $0x80] sm:$0xff]  ;;  %s2229_s18 = scalar_lea.vmem %s2879_s1, %s1849_s29  ;;  %s2819_s19 = scalar_lea.vmem %s2887_s9, %s1849_s29 }
  0x11   : > { %v591_v49 = vld [vmem:[%s2881_s3 + $0x98] sm:$0xff]  ;;  %1570 = vmatpush1.bf16.msra.mxu0 %v1569_v34  ;;  %v1575_v52 = vpack.c.bf16 %v414_v47, %v412_v46  ;;  %v413_v54 = vld [vmem:[%s2880_s2 + $0x90] sm:$0xff]  ;;  %v588_v55 = vld [vmem:[%s2881_s3 + $0x80] sm:$0xff] }
  0x12   : > { %1634 = vmatpush1.bf16.msra.mxu1 %v1633_v38  ;;  %1572 = vmatprep.subr.bf16.mxu0 %v1571_v39  ;;  %v1639_v56 = vpack.c.bf16 %v591_v49, %v589_v48  ;;  %v590_v57 = vld [vmem:[%s2881_s3 + $0x90] sm:$0xff]  ;;  %v416_v58 = vld [vmem:[%s2880_s2 + $0xa8] sm:$0xff]  ;;  %v418_v59 = vld [vmem:[%s2880_s2 + $0xb8] sm:$0xff]  ;;  %v1577_v62 = vpack.c.bf16 %v413_v54, %v411_v53 }
  0x13   : > { %1636 = vmatprep.subr.bf16.mxu1 %v1635_v43  ;;  %v593_v60 = vld [vmem:[%s2881_s3 + $0xa8] sm:$0xff]  ;;  %v595_v61 = vld [vmem:[%s2881_s3 + $0xb8] sm:$0xff]  ;;  %v1641_v63 = vpack.c.bf16 %v590_v57, %v588_v55  ;;  %v1579_v0 = vpack.c.bf16 %v418_v59, %v416_v58  ;;  %v415_v1 = vld [vmem:[%s2880_s2 + $0xa0] sm:$0xff] }
  0x14   : > { %v417_v2 = vld [vmem:[%s2880_s2 + $0xb0] sm:$0xff]  ;;  %v592_v3 = vld [vmem:[%s2881_s3 + $0xa0] sm:$0xff]  ;;  %v1643_v4 = vpack.c.bf16 %v595_v61, %v593_v60  ;;  %v420_v6 = vld [vmem:[%s2880_s2 + $0xc8] sm:$0xff] }
  0x15   : > { %1574 = vmatpush1.bf16.msra.mxu0 %v1573_v50  ;;  %v594_v5 = vld [vmem:[%s2881_s3 + $0xb0] sm:$0xff]  ;;  %v422_v7 = vld [vmem:[%s2880_s2 + $0xd8] sm:$0xff]  ;;  %v597_v8 = vld [vmem:[%s2881_s3 + $0xc8] sm:$0xff]  ;;  %v1581_v10 = vpack.c.bf16 %v417_v2, %v415_v1 }
  0x16   : > { %1638 = vmatpush1.bf16.msra.mxu1 %v1637_v51  ;;  %1576 = vmatprep.subr.bf16.mxu0 %v1575_v52  ;;  %v599_v9 = vld [vmem:[%s2881_s3 + $0xd8] sm:$0xff]  ;;  %v1645_v11 = vpack.c.bf16 %v594_v5, %v592_v3  ;;  %v1583_v12 = vpack.c.bf16 %v422_v7, %v420_v6  ;;  %v419_v13 = vld [vmem:[%s2880_s2 + $0xc0] sm:$0xff]  ;;  %v421_v14 = vld [vmem:[%s2880_s2 + $0xd0] sm:$0xff] }
  0x17   : > { %1640 = vmatprep.subr.bf16.mxu1 %v1639_v56  ;;  %v596_v15 = vld [vmem:[%s2881_s3 + $0xc0] sm:$0xff]  ;;  %v1647_v16 = vpack.c.bf16 %v599_v9, %v597_v8  ;;  %v598_v17 = vld [vmem:[%s2881_s3 + $0xd0] sm:$0xff]  ;;  %v424_v18 = vld [vmem:[%s2880_s2 + $0xe8] sm:$0xff]  ;;  %v1585_v22 = vpack.c.bf16 %v421_v14, %v419_v13 }
  0x18   : > { %v426_v19 = vld [vmem:[%s2880_s2 + $0xf8] sm:$0xff]  ;;  %v601_v20 = vld [vmem:[%s2881_s3 + $0xe8] sm:$0xff]  ;;  %v1649_v23 = vpack.c.bf16 %v598_v17, %v596_v15  ;;  %v423_v25 = vld [vmem:[%s2880_s2 + $0xe0] sm:$0xff] }
  0x19   : > { %1578 = vmatpush1.bf16.msra.mxu0 %v1577_v62  ;;  %v603_v21 = vld [vmem:[%s2881_s3 + $0xf8] sm:$0xff]  ;;  %v1587_v24 = vpack.c.bf16 %v426_v19, %v424_v18  ;;  %v425_v26 = vld [vmem:[%s2880_s2 + $0xf0] sm:$0xff]  ;;  %v600_v27 = vld [vmem:[%s2881_s3 + $0xe0] sm:$0xff] }
  0x1a   : > { %1642 = vmatpush1.bf16.msra.mxu1 %v1641_v63  ;;  %1580 = vmatprep.subr.bf16.mxu0 %v1579_v0  ;;  %v1651_v28 = vpack.c.bf16 %v603_v21, %v601_v20  ;;  %v602_v29 = vld [vmem:[%s2881_s3 + $0xf0] sm:$0xff]  ;;  %v428_v30 = vld [vmem:[%s2880_s2 + $0x108] sm:$0xff]  ;;  %v430_v31 = vld [vmem:[%s2880_s2 + $0x118] sm:$0xff]  ;;  %v1589_v34 = vpack.c.bf16 %v425_v26, %v423_v25 }
  0x1b   : > { %1644 = vmatprep.subr.bf16.mxu1 %v1643_v4  ;;  %v605_v32 = vld [vmem:[%s2881_s3 + $0x108] sm:$0xff]  ;;  %v607_v33 = vld [vmem:[%s2881_s3 + $0x118] sm:$0xff]  ;;  %v1653_v35 = vpack.c.bf16 %v602_v29, %v600_v27  ;;  %v1591_v36 = vpack.c.bf16 %v430_v31, %v428_v30  ;;  %v427_v37 = vld [vmem:[%s2880_s2 + $0x100] sm:$0xff] }
  0x1c   : > { %v429_v38 = vld [vmem:[%s2880_s2 + $0x110] sm:$0xff]  ;;  %v604_v39 = vld [vmem:[%s2881_s3 + $0x100] sm:$0xff]  ;;  %v1655_v40 = vpack.c.bf16 %v607_v33, %v605_v32  ;;  %v432_v42 = vld [vmem:[%s2880_s2 + $0x128] sm:$0xff] }
  0x1d   : > { %1582 = vmatpush1.bf16.msra.mxu0 %v1581_v10  ;;  %v606_v41 = vld [vmem:[%s2881_s3 + $0x110] sm:$0xff]  ;;  %v434_v43 = vld [vmem:[%s2880_s2 + $0x138] sm:$0xff]  ;;  %v609_v44 = vld [vmem:[%s2881_s3 + $0x128] sm:$0xff]  ;;  %v1593_v46 = vpack.c.bf16 %v429_v38, %v427_v37 }
  0x1e   : > { %1646 = vmatpush1.bf16.msra.mxu1 %v1645_v11  ;;  %1584 = vmatprep.subr.bf16.mxu0 %v1583_v12  ;;  %v611_v45 = vld [vmem:[%s2881_s3 + $0x138] sm:$0xff]  ;;  %v1657_v47 = vpack.c.bf16 %v606_v41, %v604_v39  ;;  %v1595_v48 = vpack.c.bf16 %v434_v43, %v432_v42  ;;  %v431_v49 = vld [vmem:[%s2880_s2 + $0x120] sm:$0xff]  ;;  %v433_v50 = vld [vmem:[%s2880_s2 + $0x130] sm:$0xff] }
  0x1f   : > { %1648 = vmatprep.subr.bf16.mxu1 %v1647_v16  ;;  %v608_v51 = vld [vmem:[%s2881_s3 + $0x120] sm:$0xff]  ;;  %v1659_v52 = vpack.c.bf16 %v611_v45, %v609_v44  ;;  %v610_v53 = vld [vmem:[%s2881_s3 + $0x130] sm:$0xff]  ;;  %v436_v54 = vld [vmem:[%s2880_s2 + $0x148] sm:$0xff]  ;;  %v1597_v58 = vpack.c.bf16 %v433_v50, %v431_v49 }
  0x20   : > { %v438_v55 = vld [vmem:[%s2880_s2 + $0x158] sm:$0xff]  ;;  %v613_v56 = vld [vmem:[%s2881_s3 + $0x148] sm:$0xff]  ;;  %v1661_v59 = vpack.c.bf16 %v610_v53, %v608_v51  ;;  %v435_v61 = vld [vmem:[%s2880_s2 + $0x140] sm:$0xff] }
  0x21   : > { %1586 = vmatpush1.bf16.msra.mxu0 %v1585_v22  ;;  %v615_v57 = vld [vmem:[%s2881_s3 + $0x158] sm:$0xff]  ;;  %v1599_v60 = vpack.c.bf16 %v438_v55, %v436_v54  ;;  %v437_v62 = vld [vmem:[%s2880_s2 + $0x150] sm:$0xff]  ;;  %v612_v63 = vld [vmem:[%s2881_s3 + $0x140] sm:$0xff] }
  0x22   : > { %1650 = vmatpush1.bf16.msra.mxu1 %v1649_v23  ;;  %1588 = vmatprep.subr.bf16.mxu0 %v1587_v24  ;;  %v1663_v0 = vpack.c.bf16 %v615_v57, %v613_v56  ;;  %v614_v1 = vld [vmem:[%s2881_s3 + $0x150] sm:$0xff]  ;;  %v440_v2 = vld [vmem:[%s2880_s2 + $0x168] sm:$0xff]  ;;  %v442_v3 = vld [vmem:[%s2880_s2 + $0x178] sm:$0xff]  ;;  %v1601_v6 = vpack.c.bf16 %v437_v62, %v435_v61 }
  0x23   : > { %1652 = vmatprep.subr.bf16.mxu1 %v1651_v28  ;;  %v617_v4 = vld [vmem:[%s2881_s3 + $0x168] sm:$0xff]  ;;  %v619_v5 = vld [vmem:[%s2881_s3 + $0x178] sm:$0xff]  ;;  %v439_v7 = vld [vmem:[%s2880_s2 + $0x160] sm:$0xff]  ;;  %v1665_v8 = vpack.c.bf16 %v614_v1, %v612_v63  ;;  %v1603_v9 = vpack.c.bf16 %v442_v3, %v440_v2 }
  0x24   : > { %v441_v10 = vld [vmem:[%s2880_s2 + $0x170] sm:$0xff]  ;;  %v616_v11 = vld [vmem:[%s2881_s3 + $0x160] sm:$0xff]  ;;  %v1667_v13 = vpack.c.bf16 %v619_v5, %v617_v4  ;;  %v444_v14 = vld [vmem:[%s2880_s2 + $0x188] sm:$0xff] }
  0x25   : > { %1590 = vmatpush1.bf16.msra.mxu0 %v1589_v34  ;;  %v618_v12 = vld [vmem:[%s2881_s3 + $0x170] sm:$0xff]  ;;  %v446_v15 = vld [vmem:[%s2880_s2 + $0x198] sm:$0xff]  ;;  %v354_v16 = vld [vmem:[%s2219_s12 + $0x8] sm:$0xff]  ;;  %v1605_v20 = vpack.c.bf16 %v441_v10, %v439_v7 }
  0x26   : > { %1654 = vmatpush1.bf16.msra.mxu1 %v1653_v35  ;;  %1592 = vmatprep.subr.bf16.mxu0 %v1591_v36  ;;  %v621_v17 = vld [vmem:[%s2881_s3 + $0x188] sm:$0xff]  ;;  %v623_v18 = vld [vmem:[%s2881_s3 + $0x198] sm:$0xff]  ;;  %v1669_v21 = vpack.c.bf16 %v618_v12, %v616_v11  ;;  %v1607_v22 = vpack.c.bf16 %v446_v15, %v444_v14  ;;  %v443_v23 = vld [vmem:[%s2880_s2 + $0x180] sm:$0xff] }
  0x27   : > { %1656 = vmatprep.subr.bf16.mxu1 %v1655_v40  ;;  %523 = vmatprep.mubr.f32.mxu0 %v354_v16  ;;  %v2254_v19 = vld [vmem:[%s2229_s18 + $0x8] sm:$0xff]  ;;  %v445_v24 = vld [vmem:[%s2880_s2 + $0x190] sm:$0xff]  ;;  %v620_v25 = vld [vmem:[%s2881_s3 + $0x180] sm:$0xff]  ;;  %v1671_v26 = vpack.c.bf16 %v623_v18, %v621_v17 }
  0x28   : > { %700 = vmatprep.mubr.f32.mxu1 %v2254_v19  ;;  %v622_v27 = vld [vmem:[%s2881_s3 + $0x190] sm:$0xff]  ;;  %v448_v28 = vld [vmem:[%s2880_s2 + $0x1a8] sm:$0xff]  ;;  %v450_v29 = vld [vmem:[%s2880_s2 + $0x1b8] sm:$0xff]  ;;  %v1609_v32 = vpack.c.bf16 %v445_v24, %v443_v23 }
  0x29   : > { %1594 = vmatpush1.bf16.msra.mxu0 %v1593_v46  ;;  %v625_v30 = vld [vmem:[%s2881_s3 + $0x1a8] sm:$0xff]  ;;  %v627_v31 = vld [vmem:[%s2881_s3 + $0x1b8] sm:$0xff]  ;;  %v1673_v33 = vpack.c.bf16 %v622_v27, %v620_v25  ;;  %v1611_v34 = vpack.c.bf16 %v450_v29, %v448_v28  ;;  %v447_v35 = vld [vmem:[%s2880_s2 + $0x1a0] sm:$0xff] }
  0x2a   : > { %1658 = vmatpush1.bf16.msra.mxu1 %v1657_v47  ;;  %1596 = vmatprep.subr.bf16.mxu0 %v1595_v48  ;;  %v449_v36 = vld [vmem:[%s2880_s2 + $0x1b0] sm:$0xff]  ;;  %v624_v37 = vld [vmem:[%s2881_s3 + $0x1a0] sm:$0xff]  ;;  %v1675_v38 = vpack.c.bf16 %v627_v31, %v625_v30  ;;  %v452_v40 = vld [vmem:[%s2880_s2 + $0x1c8] sm:$0xff] }
  0x2b   : > { %1660 = vmatprep.subr.bf16.mxu1 %v1659_v52  ;;  %v626_v39 = vld [vmem:[%s2881_s3 + $0x1b0] sm:$0xff]  ;;  %v454_v41 = vld [vmem:[%s2880_s2 + $0x1d8] sm:$0xff]  ;;  %v629_v42 = vld [vmem:[%s2881_s3 + $0x1c8] sm:$0xff]  ;;  %v1613_v44 = vpack.c.bf16 %v449_v36, %v447_v35 }
  0x2c   : > { %v631_v43 = vld [vmem:[%s2881_s3 + $0x1d8] sm:$0xff]  ;;  %v1677_v45 = vpack.c.bf16 %v626_v39, %v624_v37  ;;  %v1615_v46 = vpack.c.bf16 %v454_v41, %v452_v40  ;;  %v451_v47 = vld [vmem:[%s2880_s2 + $0x1c0] sm:$0xff]  ;;  %v453_v48 = vld [vmem:[%s2880_s2 + $0x1d0] sm:$0xff] }
  0x2d   : > { %1598 = vmatpush1.bf16.msra.mxu0 %v1597_v58  ;;  %v628_v49 = vld [vmem:[%s2881_s3 + $0x1c0] sm:$0xff]  ;;  %v1679_v50 = vpack.c.bf16 %v631_v43, %v629_v42  ;;  %v630_v51 = vld [vmem:[%s2881_s3 + $0x1d0] sm:$0xff]  ;;  %v456_v52 = vld [vmem:[%s2880_s2 + $0x1e8] sm:$0xff]  ;;  %v1617_v56 = vpack.c.bf16 %v453_v48, %v451_v47 }
  0x2e   : > { %1662 = vmatpush1.bf16.msra.mxu1 %v1661_v59  ;;  %1600 = vmatprep.subr.bf16.mxu0 %v1599_v60  ;;  %v458_v53 = vld [vmem:[%s2880_s2 + $0x1f8] sm:$0xff]  ;;  %v633_v54 = vld [vmem:[%s2881_s3 + $0x1e8] sm:$0xff]  ;;  %v1681_v57 = vpack.c.bf16 %v630_v51, %v628_v49  ;;  %v455_v59 = vld [vmem:[%s2880_s2 + $0x1e0] sm:$0xff] }
  0x2f   : > { %1664 = vmatprep.subr.bf16.mxu1 %v1663_v0  ;;  %v635_v55 = vld [vmem:[%s2881_s3 + $0x1f8] sm:$0xff]  ;;  %v1619_v58 = vpack.c.bf16 %v458_v53, %v456_v52  ;;  %v457_v60 = vld [vmem:[%s2880_s2 + $0x1f0] sm:$0xff]  ;;  %v632_v62 = vld [vmem:[%s2881_s3 + $0x1e0] sm:$0xff] }
  0x30   : > { %v1683_v61 = vpack.c.bf16 %v635_v55, %v633_v54  ;;  %v634_v63 = vld [vmem:[%s2881_s3 + $0x1f0] sm:$0xff]  ;;  %v372_v0 = vld [vmem:[%s2229_s18 + $0x18] sm:$0xff]  ;;  %v856_v1 = vld [vmem:[%s2882_s4 + $0x8] sm:$0xff]  ;;  %v1621_v3 = vpack.c.bf16 %v457_v60, %v455_v59 }
  0x31   : > { %1602 = vmatpush1.bf16.msra.mxu0 %v1601_v6  ;;  %v858_v2 = vld [vmem:[%s2882_s4 + $0x18] sm:$0xff]  ;;  %v1685_v4 = vpack.c.bf16 %v634_v63, %v632_v62  ;;  %v1687_v5 = vpack.c.bf16 %v372_v0, %v2254_v19  ;;  %v353_v6 = vld [vmem:[%s2219_s12] sm:$0xff]  ;;  %v371_v7 = vld [vmem:[%s2229_s18 + $0x10] sm:$0xff] }
  0x32   : > { %1666 = vmatpush1.bf16.msra.mxu1 %v1665_v8  ;;  %1604 = vmatprep.subr.bf16.mxu0 %v1603_v9  ;;  %v374_v8 = vld [vmem:[%s2229_s18 + $0x28] sm:$0xff]  ;;  %v1711_v9 = vpack.c.bf16 %v858_v2, %v856_v1  ;;  %v2353_v10 = vld [vmem:[%s2229_s18 + $0x38] sm:$0xff]  ;;  %v855_v11 = vld [vmem:[%s2882_s4] sm:$0xff] }
  0x33   : > { %1668 = vmatprep.subr.bf16.mxu1 %v1667_v13  ;;  %v857_v12 = vld [vmem:[%s2882_s4 + $0x10] sm:$0xff]  ;;  %v369_v13 = vld [vmem:[%s2229_s18] sm:$0xff]  ;;  %v860_v14 = vld [vmem:[%s2882_s4 + $0x28] sm:$0xff]  ;;  %v1691_v18 = vpack.c.bf16 %v2353_v10, %v374_v8 }
  0x34   : > { %v862_v15 = vld [vmem:[%s2882_s4 + $0x38] sm:$0xff]  ;;  %v1689_v17 = vpack.c.bf16 %v371_v7, %v369_v13  ;;  %v373_v19 = vld [vmem:[%s2229_s18 + $0x20] sm:$0xff]  ;;  %v355_v27 = vld [vmem:[%s2219_s12 + $0x10] sm:$0xff] }
  0x35   : > { %1606 = vmatpush1.bf16.msra.mxu0 %v1605_v20  ;;  %v356_v16 = vld [vmem:[%s2219_s12 + $0x18] sm:$0xff]  ;;  %v2372_v20 = vld [vmem:[%s2229_s18 + $0x30] sm:$0xff]  ;;  %v1715_v24 = vpack.c.bf16 %v862_v15, %v860_v14  ;;  %v859_v25 = vld [vmem:[%s2882_s4 + $0x20] sm:$0xff] }
  0x36   : > { %1670 = vmatpush1.bf16.msra.mxu1 %v1669_v21  ;;  %1608 = vmatprep.subr.bf16.mxu0 %v1607_v22  ;;  %v2375_v21 = vld [vmem:[%s2229_s18 + $0x48] sm:$0xff]  ;;  %v1713_v22 = vpack.c.bf16 %v857_v12, %v855_v11  ;;  %v2378_v23 = vld [vmem:[%s2229_s18 + $0x58] sm:$0xff]  ;;  %v1693_v31 = vpack.c.bf16 %v2372_v20, %v373_v19  ;;  %v863_v39 = vld [vmem:[%s2882_s4 + $0x40] sm:$0xff] }
  0x37   : > { %1672 = vmatprep.subr.bf16.mxu1 %v1671_v26  ;;  %v861_v26 = vld [vmem:[%s2882_s4 + $0x30] sm:$0xff]  ;;  %v864_v28 = vld [vmem:[%s2882_s4 + $0x48] sm:$0xff]  ;;  %v866_v29 = vld [vmem:[%s2882_s4 + $0x58] sm:$0xff] }
  0x38   : > { %v358_v30 = vld [vmem:[%s2219_s12 + $0x28] sm:$0xff]  ;;  %v1717_v36 = vpack.c.bf16 %v861_v26, %v859_v25  ;;  %v2407_v37 = vld [vmem:[%s2229_s18 + $0x78] sm:$0xff]  ;;  %v865_v40 = vld [vmem:[%s2882_s4 + $0x50] sm:$0xff] }
  0x39   : > { %1610 = vmatpush1.bf16.msra.mxu0 %v1609_v32  ;;  %v1695_v32 = vpack.c.bf16 %v2378_v23, %v2375_v21  ;;  %v2404_v35 = vld [vmem:[%s2229_s18 + $0x68] sm:$0xff]  ;;  %v357_v41 = vld [vmem:[%s2219_s12 + $0x20] sm:$0xff]  ;;  %v870_v43 = vld [vmem:[%s2882_s4 + $0x78] sm:$0xff] }
  0x3a   : > { %1674 = vmatpush1.bf16.msra.mxu1 %v1673_v33  ;;  %1612 = vmatprep.subr.bf16.mxu0 %v1611_v34  ;;  %v2398_v33 = vld [vmem:[%s2229_s18 + $0x40] sm:$0xff]  ;;  %v2401_v34 = vld [vmem:[%s2229_s18 + $0x50] sm:$0xff]  ;;  %v868_v42 = vld [vmem:[%s2882_s4 + $0x68] sm:$0xff] }
  0x3b   : > { %1676 = vmatprep.subr.bf16.mxu1 %v1675_v38  ;;  %v1719_v38 = vpack.c.bf16 %v866_v29, %v864_v28  ;;  %v2428_v47 = vld [vmem:[%s2229_s18 + $0x60] sm:$0xff]  ;;  %v2431_v48 = vld [vmem:[%s2229_s18 + $0x70] sm:$0xff]  ;;  %v2434_v49 = vld [vmem:[%s2229_s18 + $0x88] sm:$0xff]  ;;  %v1723_v52 = vpack.c.bf16 %v870_v43, %v868_v42 }
  0x3c   : > { %v2437_v51 = vld [vmem:[%s2229_s18 + $0x98] sm:$0xff]  ;;  %v867_v53 = vld [vmem:[%s2882_s4 + $0x60] sm:$0xff]  ;;  %v869_v54 = vld [vmem:[%s2882_s4 + $0x70] sm:$0xff]  ;;  %v1701_v59 = vpack.c.bf16 %v2431_v48, %v2428_v47 }
  0x3d   : > { %1614 = vmatpush1.bf16.msra.mxu0 %v1613_v44  ;;  %v360_v44 = vld [vmem:[%s2219_s12 + $0x38] sm:$0xff]  ;;  %v359_v55 = vld [vmem:[%s2219_s12 + $0x30] sm:$0xff]  ;;  %v1703_v60 = vpack.c.bf16 %v2437_v51, %v2434_v49  ;;  %v2465_v63 = vld [vmem:[%s2229_s18 + $0xa8] sm:$0xff] }
  0x3e   : > { %1678 = vmatpush1.bf16.msra.mxu1 %v1677_v45  ;;  %1616 = vmatprep.subr.bf16.mxu0 %v1615_v46  ;;  %v1697_v45 = vpack.c.bf16 %v2401_v34, %v2398_v33  ;;  %v1699_v46 = vpack.c.bf16 %v2407_v37, %v2404_v35  ;;  %v2462_v62 = vld [vmem:[%s2229_s18 + $0x90] sm:$0xff]  ;;  %v2468_v1 = vld [vmem:[%s2229_s18 + $0xb8] sm:$0xff]  ;;  %v2491_v11 = vld [vmem:[%s2229_s18 + $0xa0] sm:$0xff] }
  0x3f   : > { %1680 = vmatprep.subr.bf16.mxu1 %v1679_v50  ;;  %v1721_v50 = vpack.c.bf16 %v865_v40, %v863_v39  ;;  %v2494_v12 = vld [vmem:[%s2229_s18 + $0xb0] sm:$0xff]  ;;  %v875_v15 = vld [vmem:[%s2882_s4 + $0xa0] sm:$0xff]  ;;  %v884_v28 = vld [vmem:[%s2882_s4 + $0xe8] sm:$0xff]  ;;  %v1867_v39 = vmov 0.0  }
  0x40   : > { %v879_v26 = vld [vmem:[%s2882_s4 + $0xc0] sm:$0xff]  ;;  %v886_v29 = vld [vmem:[%s2882_s4 + $0xf8] sm:$0xff] }
  0x41   : > { %1618 = vmatpush1.bf16.msra.mxu0 %v1617_v56  ;;  %v872_v56 = vld [vmem:[%s2882_s4 + $0x88] sm:$0xff]  ;;  %v779_v40 = vld [vmem:[%s2884_s6] sm:$0x1] }
  0x42   : > { %1682 = vmatpush1.bf16.msra.mxu1 %v1681_v57  ;;  %1620 = vmatprep.subr.bf16.mxu0 %v1619_v58  ;;  %v874_v57 = vld [vmem:[%s2882_s4 + $0x98] sm:$0xff]  ;;  %v362_v58 = vld [vmem:[%s2219_s12 + $0x48] sm:$0xff]  ;;  %v887_v43 = vld [vmem:[%s2882_s4 + $0x100] sm:$0xff] }
  0x43   : > { %1684 = vmatprep.subr.bf16.mxu1 %v1683_v61  ;;  %v2459_v61 = vld [vmem:[%s2229_s18 + $0x80] sm:$0xff]  ;;  %v1727_v2 = vpack.c.bf16 %v874_v57, %v872_v56  ;;  %v897_v56 = vld [vmem:[%s2882_s4 + $0x150] sm:$0xff] }
  0x45   : > { %1622 = vmatpush1.bf16.msra.mxu0 %v1621_v3  ;;  %v871_v3 = vld [vmem:[%s2882_s4 + $0x80] sm:$0xff] }
  0x46   : > { %1686 = vmatpush1.bf16.msra.mxu1 %v1685_v4  ;;  %1688 = vmatprep.subr.bf16.mxu0 %v1687_v5  ;;  %v873_v4 = vld [vmem:[%s2882_s4 + $0x90] sm:$0xff]  ;;  %v361_v5 = vld [vmem:[%s2219_s12 + $0x40] sm:$0xff] }
  0x47   : > { %1712 = vmatprep.subr.bf16.mxu1 %v1711_v9  ;;  %v1705_v9 = vpack.c.bf16 %v2462_v62, %v2459_v61 }
  0x48   : > { %524 = vmatmul.mubr.f32.vlgmr.msra.gmra.mrb[0].mxu0 %v353_v6  ;;  %v876_v6 = vld [vmem:[%s2882_s4 + $0xa8] sm:$0xff] }
  0x49   : > { %701 = vmatmul.mubr.f32.vlgmr.msra.gmra.mrb[0].mxu1 %v369_v13  ;;  %529 = vmatprep.mubr.f32.mxu0 %v356_v16  ;;  %v1729_v13 = vpack.c.bf16 %v873_v4, %v871_v3  ;;  %v877_v16 = vld [vmem:[%s2882_s4 + $0xb0] sm:$0xff]  ;;  %v903_v3 = vld [vmem:[%s2882_s4 + $0x180] sm:$0xff] }
  0x4a   : > { %706 = vmatprep.mubr.f32.mxu1 %v372_v0  ;;  %1690 = vmatpush1.bf16.msra.mxu0 %v1689_v17  ;;  %v1725_v0 = vpack.c.bf16 %v869_v54, %v867_v53  ;;  %v363_v17 = vld [vmem:[%s2219_s12 + $0x50] sm:$0xff]  ;;  %v898_v53 = vld [vmem:[%s2882_s4 + $0x158] sm:$0xff] }
  0x4b   : > { %1692 = vmatprep.subr.bf16.mxu0 %v1691_v18  ;;  %1714 = vmatpush1.bf16.msra.mxu1 %v1713_v22  ;;  %v880_v18 = vld [vmem:[%s2882_s4 + $0xc8] sm:$0xff]  ;;  %v1733_v22 = vpack.c.bf16 %v877_v16, %v875_v15  ;;  %v905_v4 = vld [vmem:[%s2882_s4 + $0x190] sm:$0xff]  ;;  %v911_v15 = vld [vmem:[%s2882_s4 + $0x1c0] sm:$0xff] }
  0x4c   : > { %530 = vmatmul.mubr.f32.gmra.mrb[2].mxu0 %v355_v27  ;;  %1716 = vmatprep.subr.bf16.mxu1 %v1715_v24  ;;  %v394_v24 = vld [vmem:[%s2229_s18 + $0xc8] sm:$0xff]  ;;  %v365_v27 = vld [vmem:[%s2219_s12 + $0x60] sm:$0xff]  ;;  %v913_v16 = vld [vmem:[%s2882_s4 + $0x1d0] sm:$0xff] }
  0x4d   : > { %707 = vmatmul.mubr.f32.gmra.mrb[2].mxu1 %v371_v7  ;;  %535 = vmatprep.mubr.f32.mxu0 %v358_v30  ;;  %v878_v7 = vld [vmem:[%s2882_s4 + $0xb8] sm:$0xff] }
  0x4e   : > { %712 = vmatprep.mubr.f32.mxu1 %v374_v8  ;;  %1694 = vmatpush1.bf16.msra.mxu0 %v1693_v31  ;;  %v364_v8 = vld [vmem:[%s2219_s12 + $0x58] sm:$0xff]  ;;  %v1731_v14 = vpack.c.bf16 %v878_v7, %v876_v6  ;;  %v393_v31 = vld [vmem:[%s2229_s18 + $0xc0] sm:$0xff]  ;;  %v908_v6 = vld [vmem:[%s2882_s4 + $0x1a8] sm:$0xff] }
  0x4f   : > { %1696 = vmatprep.subr.bf16.mxu0 %v1695_v32  ;;  %1718 = vmatpush1.bf16.msra.mxu1 %v1717_v36  ;;  %v368_v30 = vld [vmem:[%s2219_s12 + $0x78] sm:$0xff]  ;;  %v885_v36 = vld [vmem:[%s2882_s4 + $0xf0] sm:$0xff] }
  0x50   : > { %536 = vmatmul.mubr.f32.gmra.mrb[4].mxu0 %v357_v41  ;;  %1720 = vmatprep.subr.bf16.mxu1 %v1719_v38  ;;  %v890_v41 = vld [vmem:[%s2882_s4 + $0x118] sm:$0xff] }
  0x51   : > { %713 = vmatmul.mubr.f32.gmra.mrb[4].mxu1 %v373_v19  ;;  %541 = vmatprep.mubr.f32.mxu0 %v360_v44  ;;  %v882_v19 = vld [vmem:[%s2882_s4 + $0xd8] sm:$0xff]  ;;  %v889_v44 = vld [vmem:[%s2882_s4 + $0x110] sm:$0xff] }
  0x52   : > { %718 = vmatprep.mubr.f32.mxu1 %v2353_v10  ;;  %1698 = vmatpush1.bf16.msra.mxu0 %v1697_v45  ;;  %v1707_v10 = vpack.c.bf16 %v2468_v1, %v2465_v63  ;;  %v1735_v25 = vpack.c.bf16 %v882_v19, %v880_v18  ;;  %v1745_v45 = vpack.c.bf16 %v889_v44, %v887_v43  ;;  %v910_v7 = vld [vmem:[%s2882_s4 + $0x1b8] sm:$0xff]  ;;  %v916_v18 = vld [vmem:[%s2882_s4 + $0x1e8] sm:$0xff] }
  0x53   : > { %1700 = vmatprep.subr.bf16.mxu0 %v1699_v46  ;;  %1722 = vmatpush1.bf16.msra.mxu1 %v1721_v50  ;;  %v892_v46 = vld [vmem:[%s2882_s4 + $0x128] sm:$0xff]  ;;  %v893_v50 = vld [vmem:[%s2882_s4 + $0x130] sm:$0xff]  ;;  %v918_v19 = vld [vmem:[%s2882_s4 + $0x1f8] sm:$0xff] }
  0x54   : > { %542 = vmatmul.mubr.f32.gmra.mrb[6].mxu0 %v359_v55  ;;  %1724 = vmatprep.subr.bf16.mxu1 %v1723_v52  ;;  %v896_v52 = vld [vmem:[%s2882_s4 + $0x148] sm:$0xff]  ;;  %v895_v55 = vld [vmem:[%s2882_s4 + $0x140] sm:$0xff] }
  0x55   : > { %719 = vmatmul.mubr.f32.gmra.mrb[6].mxu1 %v2372_v20  ;;  %547 = vmatprep.mubr.f32.mxu0 %v362_v58  ;;  %v366_v20 = vld [vmem:[%s2219_s12 + $0x68] sm:$0xff]  ;;  %v1751_v54 = vpack.c.bf16 %v898_v53, %v896_v52  ;;  %v1753_v57 = vpack.c.bf16 %v897_v56, %v895_v55 }
  0x56   : > { %724 = vmatprep.mubr.f32.mxu1 %v2375_v21  ;;  %1702 = vmatpush1.bf16.msra.mxu0 %v1701_v59  ;;  %v1709_v21 = vpack.c.bf16 %v2494_v12, %v2491_v11  ;;  %v900_v58 = vld [vmem:[%s2882_s4 + $0x168] sm:$0xff]  ;;  %v902_v59 = vld [vmem:[%s2882_s4 + $0x178] sm:$0xff] }
  0x57   : > { %1704 = vmatprep.subr.bf16.mxu0 %v1703_v60  ;;  %1726 = vmatpush1.bf16.msra.mxu1 %v1725_v0  ;;  %v1755_v60 = vpack.c.bf16 %v902_v59, %v900_v58  ;;  %v904_v0 = vld [vmem:[%s2882_s4 + $0x188] sm:$0xff] }
  0x58   : > { %548 = vmatmul.mubr.f32.gmra.mrb[8].mxu0 %v361_v5  ;;  %1728 = vmatprep.subr.bf16.mxu1 %v1727_v2  ;;  %v1761_v5 = vpack.c.bf16 %v905_v4, %v903_v3 }
  0x59   : > { %725 = vmatmul.mubr.f32.gmra.mrb[8].mxu1 %v2398_v33  ;;  %553 = vmatprep.mubr.f32.mxu0 %v364_v8  ;;  %v1739_v33 = vpack.c.bf16 %v886_v29, %v884_v28  ;;  %v1763_v8 = vpack.c.bf16 %v910_v7, %v908_v6 }
  0x5a   : > { %730 = vmatprep.mubr.f32.mxu1 %v2378_v23  ;;  %1706 = vmatpush1.bf16.msra.mxu0 %v1705_v9  ;;  %v881_v23 = vld [vmem:[%s2882_s4 + $0xd0] sm:$0xff]  ;;  %v907_v9 = vld [vmem:[%s2882_s4 + $0x1a0] sm:$0xff] }
  0x5b   : > { %1708 = vmatprep.subr.bf16.mxu0 %v1707_v10  ;;  %1730 = vmatpush1.bf16.msra.mxu1 %v1729_v13  ;;  %v1737_v32 = vpack.c.bf16 %v881_v23, %v879_v26  ;;  %v909_v10 = vld [vmem:[%s2882_s4 + $0x1b0] sm:$0xff]  ;;  %v914_v13 = vld [vmem:[%s2882_s4 + $0x1d8] sm:$0xff] }
  0x5c   : > { %554 = vmatmul.mubr.f32.gmra.mrb[10].mxu0 %v363_v17  ;;  %1732 = vmatprep.subr.bf16.mxu1 %v1731_v14  ;;  %v1769_v17 = vpack.c.bf16 %v913_v16, %v911_v15 }
  0x5d   : > { %731 = vmatmul.mubr.f32.gmra.mrb[10].mxu1 %v2401_v34  ;;  %559 = vmatprep.mubr.f32.mxu0 %v366_v20  ;;  %v883_v34 = vld [vmem:[%s2882_s4 + $0xe0] sm:$0xff]  ;;  %v1771_v20 = vpack.c.bf16 %v918_v19, %v916_v18 }
  0x5e   : > { %736 = vmatprep.mubr.f32.mxu1 %v2404_v35  ;;  %1710 = vmatpush1.bf16.msra.mxu0 %v1709_v21  ;;  %v367_v35 = vld [vmem:[%s2219_s12 + $0x70] sm:$0xff]  ;;  %v1741_v38 = vpack.c.bf16 %v885_v36, %v883_v34  ;;  %v915_v21 = vld [vmem:[%s2882_s4 + $0x1e0] sm:$0xff] }
  0x5f   : > { %808 = vmatprep.subr.mxu0 %v394_v24  ;;  %1734 = vmatpush1.bf16.msra.mxu1 %v1733_v22  ;;  %v917_v22 = vld [vmem:[%s2882_s4 + $0x1f0] sm:$0xff] }
  0x60   : > { %560 = vmatmul.mubr.f32.gmra.mrb[12].mxu0 %v365_v27  ;;  %1736 = vmatprep.subr.bf16.mxu1 %v1735_v25 }
  0x61   : > { %737 = vmatmul.mubr.f32.gmra.mrb[12].mxu1 %v2428_v47  ;;  %565 = vmatprep.mubr.f32.mxu0 %v368_v30  ;;  %v894_v47 = vld [vmem:[%s2882_s4 + $0x138] sm:$0xff] }
  0x62   : > { %742 = vmatprep.mubr.f32.mxu1 %v2407_v37  ;;  %809 = vmatpush1.msra.mxu0 %v393_v31  ;;  %v888_v37 = vld [vmem:[%s2882_s4 + $0x108] sm:$0xff] }
  0x63   : > { %1738 = vmatpush1.bf16.msra.mxu1 %v1737_v32  ;;  %v1743_v42 = vpack.c.bf16 %v890_v41, %v888_v37 }
  0x64   : > { %566 = vmatmul.mubr.f32.gmra.mrb[14].mxu0 %v367_v35  ;;  %1740 = vmatprep.subr.bf16.mxu1 %v1739_v33 }
  0x65   : > { %743 = vmatmul.mubr.f32.gmra.mrb[14].mxu1 %v2431_v48  ;;  %848 = vmatprep.mubr.f32.mxu0 %v1867_v39  ;;  %v1747_v48 = vpack.c.bf16 %v894_v47, %v892_v46 }
  0x66   : > { %748 = vmatprep.mubr.f32.mxu1 %v2434_v49  ;;  %v891_v49 = vld [vmem:[%s2882_s4 + $0x120] sm:$0xff] }
  0x67   : > { %1742 = vmatpush1.bf16.msra.mxu1 %v1741_v38 }
  0x68   : > { %1529 = vmatmul.mubr.msk.f32.vlgmr.msra.gmra.mrb[16].mxu0 %vm780_vm0, %v779_v40  ;;  %1744 = vmatprep.subr.bf16.mxu1 %v1743_v42 }
  0x69   : > { %749 = vmatmul.mubr.f32.gmra.mrb[16].mxu1 %v2459_v61  ;;  %1131 = vmatprep.mubr.f32.mxu0 %v1867_v39  ;;  %v899_v61 = vld [vmem:[%s2882_s4 + $0x160] sm:$0xff] }
  0x6a   : > { %754 = vmatprep.mubr.f32.mxu1 %v2437_v51  ;;  %v1749_v51 = vpack.c.bf16 %v893_v50, %v891_v49 }
  0x6b   : > { %1746 = vmatpush1.bf16.msra.mxu1 %v1745_v45 }
  0x6c   : > { %1748 = vmatprep.subr.bf16.mxu1 %v1747_v48 }
  0x6d   : > { %755 = vmatmul.mubr.f32.gmra.mrb[18].mxu1 %v2462_v62  ;;  %v901_v62 = vld [vmem:[%s2882_s4 + $0x170] sm:$0xff] }
  0x6e   : > { %760 = vmatprep.mubr.f32.mxu1 %v2465_v63  ;;  %v1757_v63 = vpack.c.bf16 %v901_v62, %v899_v61 }
  0x6f   : > { %1750 = vmatpush1.bf16.msra.mxu1 %v1749_v51 }
  0x70   : > { %1752 = vmatprep.subr.bf16.mxu1 %v1751_v54 }
  0x71   : > { %761 = vmatmul.mubr.f32.gmra.mrb[20].mxu1 %v2491_v11  ;;  %v1765_v11 = vpack.c.bf16 %v909_v10, %v907_v9 }
  0x72   : > { %766 = vmatprep.mubr.f32.mxu1 %v2468_v1  ;;  %v906_v1 = vld [vmem:[%s2882_s4 + $0x198] sm:$0xff] }
  0x73   : > { %1754 = vmatpush1.bf16.msra.mxu1 %v1753_v57  ;;  %v1759_v2 = vpack.c.bf16 %v906_v1, %v904_v0 }
  0x74   : > { %1756 = vmatprep.subr.bf16.mxu1 %v1755_v60 }
  0x75   : > { %767 = vmatmul.mubr.f32.gmra.mrb[22].mxu1 %v2494_v12  ;;  %v912_v12 = vld [vmem:[%s2882_s4 + $0x1c8] sm:$0xff] }
  0x76   : > { %772 = vmatprep.mubr.f32.mxu1 %v394_v24  ;;  %v1767_v14 = vpack.c.bf16 %v914_v13, %v912_v12  ;;  %v1773_v24 = vpack.c.bf16 %v917_v22, %v915_v21 }
  0x77   : > { %1758 = vmatpush1.bf16.msra.mxu1 %v1757_v63 }
  0x78   : > { %1760 = vmatprep.subr.bf16.mxu1 %v1759_v2 }
  0x79   : > { %773 = vmatmul.mubr.f32.gmra.mrb[24].mxu1 %v393_v31 }
  0x7b   : > { %1762 = vmatpush1.bf16.msra.mxu1 %v1761_v5 }
  0x7c   : > { %1764 = vmatprep.subr.bf16.mxu1 %v1763_v8 }
  0x7f   : > { %1766 = vmatpush1.bf16.msra.mxu1 %v1765_v11 }
  0x80   : > { %1768 = vmatprep.subr.bf16.mxu1 %v1767_v14 }
  0x83   : > { %1770 = vmatpush1.bf16.msra.mxu1 %v1769_v17 }
  0x84   : > { %1772 = vmatprep.subr.bf16.mxu1 %v1771_v20 }
  0x87   : > { %1774 = vmatpush1.bf16.msra.mxu1 %v1773_v24  ;;  %v1005_v24 = vld [vmem:[%s2885_s7 + $0x18] sm:$0xff] }
 0x11b   : > { %v525_v25 = vpop.f32.mrb[0].mxu0 }
 0x11c   : > { %v702_v26 = vpop.f32.mrb[0].mxu1  ;;  %v527_v23 = vpop.f32.mrb[1].mxu0 }
 0x11d   : > { %v704_v27 = vpop.f32.mrb[1].mxu1 }
 0x11f   : > { %v531_v28 = vpop.f32.mrb[2].mxu0 }
 0x120   : > { %v708_v29 = vpop.f32.mrb[2].mxu1  ;;  %v2652_v30 = vpack.c.bf16 %v531_v28, %v525_v25  ;;  %v533_v31 = vpop.f32.mrb[3].mxu0  ;;  %v1016_v28 = vld [vmem:[%s2886_s8 + $0x8] sm:$0xff] }
 0x121   : > { %v1777_v32 = vpack.c.bf16 %v708_v29, %v702_v26  ;;  %v710_v33 = vpop.f32.mrb[3].mxu1  ;;  %v2654_v34 = vpack.c.bf16 %v533_v31, %v527_v23  ;;  %v1015_v23 = vld [vmem:[%s2886_s8] sm:$0xff]  ;;  %v1007_v29 = vld [vmem:[%s2885_s7 + $0x28] sm:$0xff]  ;;  %v1008_v31 = vld [vmem:[%s2885_s7 + $0x30] sm:$0xff] }
 0x122   : > { %v1775_v36 = vpack.c.bf16 %v710_v33, %v704_v27  ;;  %v1006_v27 = vld [vmem:[%s2885_s7 + $0x20] sm:$0xff]  ;;  %v1009_v33 = vld [vmem:[%s2885_s7 + $0x38] sm:$0xff] }
 0x123   : > { %v537_v35 = vpop.f32.mrb[4].mxu0  ;;  %1815 = vmatprep.subr.bf16.mxu1 %v2654_v34 }
 0x124   : > { %v714_v38 = vpop.f32.mrb[4].mxu1  ;;  %1776 = vmatprep.subr.bf16.mxu0 %v1775_v36  ;;  %v539_v40 = vpop.f32.mrb[5].mxu0  ;;  %v1010_v36 = vld [vmem:[%s2885_s7 + $0x40] sm:$0xff] }
 0x125   : > { %v716_v37 = vpop.f32.mrb[5].mxu1  ;;  %1778 = vmatpush1.bf16.msra.mxu0 %v1777_v32  ;;  %v1018_v32 = vld [vmem:[%s2886_s8 + $0x18] sm:$0xff] }
 0x127   : > { %v543_v41 = vpop.f32.mrb[6].mxu0 }
 0x128   : > { %v720_v42 = vpop.f32.mrb[6].mxu1  ;;  %v2657_v43 = vpack.c.bf16 %v543_v41, %v537_v35  ;;  %v545_v44 = vpop.f32.mrb[7].mxu0  ;;  %v1020_v35 = vld [vmem:[%s2886_s8 + $0x28] sm:$0xff]  ;;  %v1022_v41 = vld [vmem:[%s2886_s8 + $0x38] sm:$0xff] }
 0x129   : > { %v1781_v45 = vpack.c.bf16 %v720_v42, %v714_v38  ;;  %v722_v46 = vpop.f32.mrb[7].mxu1  ;;  %v2659_v47 = vpack.c.bf16 %v545_v44, %v539_v40  ;;  %v1011_v38 = vld [vmem:[%s2885_s7 + $0x48] sm:$0xff]  ;;  %v1021_v40 = vld [vmem:[%s2886_s8 + $0x30] sm:$0xff]  ;;  %v1013_v42 = vld [vmem:[%s2885_s7 + $0x58] sm:$0xff] }
 0x12a   : > { %v1779_v48 = vpack.c.bf16 %v722_v46, %v716_v37  ;;  %v1012_v37 = vld [vmem:[%s2885_s7 + $0x50] sm:$0xff]  ;;  %v1014_v44 = vld [vmem:[%s2885_s7 + $0x60] sm:$0xff] }
 0x12b   : > { %v549_v49 = vpop.f32.mrb[8].mxu0  ;;  %v1025_v46 = vld [vmem:[%s2886_s8 + $0x50] sm:$0xff] }
 0x12c   : > { %v726_v50 = vpop.f32.mrb[8].mxu1  ;;  %1780 = vmatprep.subr.bf16.mxu0 %v1779_v48  ;;  %v551_v51 = vpop.f32.mrb[9].mxu0  ;;  %v1027_v48 = vld [vmem:[%s2886_s8 + $0x60] sm:$0xff] }
 0x12d   : > { %v728_v52 = vpop.f32.mrb[9].mxu1  ;;  %1782 = vmatpush1.bf16.msra.mxu0 %v1781_v45  ;;  %v1024_v45 = vld [vmem:[%s2886_s8 + $0x48] sm:$0xff] }
 0x12f   : > { %v555_v53 = vpop.f32.mrb[10].mxu0 }
 0x130   : > { %v732_v54 = vpop.f32.mrb[10].mxu1  ;;  %v2661_v55 = vpack.c.bf16 %v555_v53, %v549_v49  ;;  %v557_v56 = vpop.f32.mrb[11].mxu0  ;;  %v1002_v49 = vld [vmem:[%s2885_s7] sm:$0xff] }
 0x131   : > { %v1785_v57 = vpack.c.bf16 %v732_v54, %v726_v50  ;;  %v734_v58 = vpop.f32.mrb[11].mxu1  ;;  %v2663_v59 = vpack.c.bf16 %v557_v56, %v551_v51  ;;  %v1003_v50 = vld [vmem:[%s2885_s7 + $0x8] sm:$0xff]  ;;  %v1004_v51 = vld [vmem:[%s2885_s7 + $0x10] sm:$0xff]  ;;  %v921_v54 = vlaneseq }
 0x132   : > { %v1783_v60 = vpack.c.bf16 %v734_v58, %v728_v52 }
 0x133   : > { %v561_v61 = vpop.f32.mrb[12].mxu0  ;;  %v922_v56 = vshrl.u32 %v921_v54, 7 }
 0x134   : > { %v738_v62 = vpop.f32.mrb[12].mxu1  ;;  %1784 = vmatprep.subr.bf16.mxu0 %v1783_v60  ;;  %v563_v63 = vpop.f32.mrb[13].mxu0 }
 0x135   : > { %v740_v0 = vpop.f32.mrb[13].mxu1  ;;  %1786 = vmatpush1.bf16.msra.mxu0 %v1785_v57  ;;  %v923_v58 = vsub.s32 0, %v922_v56  ;;  %v927_v60 = vsub.s32 1, %v922_v56 }
 0x137   : > { %v567_v1 = vpop.f32.mrb[14].mxu0 }
 0x138   : > { %v744_v2 = vpop.f32.mrb[14].mxu1  ;;  %v2665_v3 = vpack.c.bf16 %v567_v1, %v561_v61  ;;  %v569_v4 = vpop.f32.mrb[15].mxu0 }
 0x139   : > { %v1789_v5 = vpack.c.bf16 %v744_v2, %v738_v62  ;;  %v746_v6 = vpop.f32.mrb[15].mxu1  ;;  %v1811_v7 = vpack.c.bf16 %v569_v4, %v563_v63 }
 0x13a   : > { %v1787_v8 = vpack.c.bf16 %v746_v6, %v740_v0 }
 0x13b   : > { %v850_v9 = vpop.f32.mrb[16].mxu0 }
 0x13c   : > { %v750_v10 = vpop.f32.mrb[16].mxu1  ;;  %1788 = vmatprep.subr.bf16.mxu0 %v1787_v8  ;;  %v852_v11 = vpop.f32.mrb[17].mxu0 }
 0x13d   : > { %v752_v12 = vpop.f32.mrb[17].mxu1  ;;  %1790 = vmatpush1.bf16.msra.mxu0 %v1789_v5  ;;  %995 = vmatprep.mubr.f32.mxu1 %v852_v11 }
 0x13e   : > { %996 = vmatmul.mubr.f32.vlgmr.msra.gmra.mrb[26].mxu1 %v850_v9 }
 0x13f   : > { %1819 = vmatpush1.bf16.msra.mxu1 %v2652_v30  ;;  %1332 = vmatprep.mubr.f32.mxu1 %v1867_v39 }
 0x140   : > { %v756_v13 = vpop.f32.mrb[18].mxu1  ;;  %1816 = vmatprep.subr.bf16.mxu1 %v2659_v47 }
 0x141   : > { %v1793_v14 = vpack.c.bf16 %v756_v13, %v750_v10  ;;  %v758_v15 = vpop.f32.mrb[19].mxu1 }
 0x142   : > { %v1791_v16 = vpack.c.bf16 %v758_v15, %v752_v12 }
 0x143   : > { %1820 = vmatpush1.bf16.msra.mxu1 %v2657_v43 }
 0x144   : > { %v762_v17 = vpop.f32.mrb[20].mxu1  ;;  %1792 = vmatprep.subr.bf16.mxu0 %v1791_v16  ;;  %1817 = vmatprep.subr.bf16.mxu1 %v2663_v59 }
 0x145   : > { %v764_v18 = vpop.f32.mrb[21].mxu1  ;;  %1794 = vmatpush1.bf16.msra.mxu0 %v1793_v14 }
 0x147   : > { %1821 = vmatpush1.bf16.msra.mxu1 %v2661_v55 }
 0x148   : > { %v768_v19 = vpop.f32.mrb[22].mxu1  ;;  %1818 = vmatprep.subr.bf16.mxu1 %v1811_v7 }
 0x149   : > { %v1797_v20 = vpack.c.bf16 %v768_v19, %v762_v17  ;;  %v770_v21 = vpop.f32.mrb[23].mxu1 }
 0x14a   : > { %v1795_v22 = vpack.c.bf16 %v770_v21, %v764_v18 }
 0x14b   : > { %1822 = vmatpush1.bf16.msra.mxu1 %v2665_v3 }
 0x14c   : > { %1796 = vmatprep.subr.bf16.mxu0 %v1795_v22  ;;  %v774_v25 = vpop.f32.mrb[24].mxu1 }
 0x14d   : > { %1798 = vmatpush1.bf16.msra.mxu0 %v1797_v20  ;;  %v776_v26 = vpop.f32.mrb[25].mxu1 }
 0x14e   : > { %1091 = vmatprep.subr.mxu0 %v776_v26  ;;  %1546 = vmatmul.mubr.msk.f32.vlgmr.msra.gmra.mrb[28].mxu1 %vm1210_vm1, %v1005_v24 }
 0x14f   : > { %1338 = vmatprep.mubr.f32.mxu1 %v1867_v39 }
 0x151   : > { %1092 = vmatpush1.msra.mxu0 %v774_v25 }
 0x152   : > { %1530 = vmatmul.mubr.msk.f32.vlgmr.msra.gmra.mrb[18].mxu0 %vm780_vm0, %v1015_v23  ;;  %1800 = vmatprep.subr.bf16.mxu0 %v2654_v34  ;;  %v1019_v34 = vld [vmem:[%s2886_s8 + $0x20] sm:$0xff] }
 0x153   : > { %1802 = vmatpush1.bf16.msra.mxu0 %v2652_v30  ;;  %1137 = vmatprep.mubr.f32.mxu0 %v1867_v39  ;;  %v1017_v30 = vld [vmem:[%s2886_s8 + $0x10] sm:$0xff] }
 0x154   : > { %1804 = vmatprep.subr.bf16.mxu0 %v2659_v47  ;;  %1547 = vmatmul.mubr.msk.f32.gmra.mrb[30].mxu1 %vm1210_vm1, %v1006_v27  ;;  %v1026_v47 = vld [vmem:[%s2886_s8 + $0x58] sm:$0xff] }
 0x155   : > { %1344 = vmatprep.mubr.f32.mxu1 %v1867_v39 }
 0x156   : > { %1531 = vmatmul.mubr.msk.f32.gmra.mrb[20].mxu0 %vm780_vm0, %v1016_v28 }
 0x157   : > { %1806 = vmatpush1.bf16.msra.mxu0 %v2657_v43  ;;  %1143 = vmatprep.mubr.f32.mxu0 %v1867_v39  ;;  %v1023_v43 = vld [vmem:[%s2886_s8 + $0x40] sm:$0xff] }
 0x158   : > { %1808 = vmatprep.subr.bf16.mxu0 %v2663_v59  ;;  %1548 = vmatmul.mubr.msk.f32.gmra.mrb[32].mxu1 %vm1210_vm1, %v1007_v29  ;;  %v919_v59 = vld [vmem:[%s2883_s5] sm:$0x3] }
 0x159   : > { %1350 = vmatprep.mubr.f32.mxu1 %v1867_v39  ;;  %v924_v62 = vrot.slane %v919_v59, %v923_v58  ;;  %v928_v63 = vrot.slane %v919_v59, %v927_v60 }
 0x15a   : > { %1532 = vmatmul.mubr.msk.f32.gmra.mrb[22].mxu0 %vm780_vm0, %v1017_v30 }
 0x15b   : > { %1810 = vmatpush1.bf16.msra.mxu0 %v2661_v55  ;;  %1149 = vmatprep.mubr.f32.mxu0 %v1867_v39 }
 0x15c   : > { %1812 = vmatprep.subr.bf16.mxu0 %v1811_v7  ;;  %1549 = vmatmul.mubr.msk.f32.gmra.mrb[34].mxu1 %vm1210_vm1, %v1008_v31 }
 0x15d   : > { %1356 = vmatprep.mubr.f32.mxu1 %v1867_v39 }
 0x15e   : > { %1533 = vmatmul.mubr.msk.f32.gmra.mrb[24].mxu0 %vm780_vm0, %v1018_v32 }
 0x15f   : > { %1814 = vmatpush1.bf16.msra.mxu0 %v2665_v3  ;;  %1155 = vmatprep.mubr.f32.mxu0 %v1867_v39 }
 0x160   : > { %1550 = vmatmul.mubr.msk.f32.gmra.mrb[36].mxu1 %vm1210_vm1, %v1009_v33 }
 0x161   : > { %1362 = vmatprep.mubr.f32.mxu1 %v1867_v39 }
 0x162   : > { %1534 = vmatmul.mubr.msk.f32.gmra.mrb[26].mxu0 %vm780_vm0, %v1019_v34 }
 0x163   : > { %1161 = vmatprep.mubr.f32.mxu0 %v1867_v39 }
 0x164   : > { %1551 = vmatmul.mubr.msk.f32.gmra.mrb[38].mxu1 %vm1210_vm1, %v1010_v36 }
 0x165   : > { %1368 = vmatprep.mubr.f32.mxu1 %v1867_v39 }
 0x166   : > { %1535 = vmatmul.mubr.msk.f32.gmra.mrb[28].mxu0 %vm780_vm0, %v1020_v35 }
 0x167   : > { %1167 = vmatprep.mubr.f32.mxu0 %v1867_v39 }
 0x168   : > { %1552 = vmatmul.mubr.msk.f32.gmra.mrb[40].mxu1 %vm1210_vm1, %v1011_v38 }
 0x169   : > { %1374 = vmatprep.mubr.f32.mxu1 %v1867_v39 }
 0x16a   : > { %1536 = vmatmul.mubr.msk.f32.gmra.mrb[30].mxu0 %vm780_vm0, %v1021_v40 }
 0x16b   : > { %1173 = vmatprep.mubr.f32.mxu0 %v1867_v39 }
 0x16c   : > { %1553 = vmatmul.mubr.msk.f32.gmra.mrb[42].mxu1 %vm1210_vm1, %v1012_v37 }
 0x16d   : > { %1380 = vmatprep.mubr.f32.mxu1 %v1867_v39 }
 0x16e   : > { %1537 = vmatmul.mubr.msk.f32.gmra.mrb[32].mxu0 %vm780_vm0, %v1022_v41 }
 0x16f   : > { %1179 = vmatprep.mubr.f32.mxu0 %v1867_v39 }
 0x170   : > { %1554 = vmatmul.mubr.msk.f32.gmra.mrb[44].mxu1 %vm1210_vm1, %v1013_v42 }
 0x171   : > { %1386 = vmatprep.mubr.f32.mxu1 %v1867_v39 }
 0x172   : > { %1538 = vmatmul.mubr.msk.f32.gmra.mrb[34].mxu0 %vm780_vm0, %v1023_v43 }
 0x173   : > { %1185 = vmatprep.mubr.f32.mxu0 %v1867_v39 }
 0x174   : > { %1555 = vmatmul.mubr.msk.f32.gmra.mrb[46].mxu1 %vm1210_vm1, %v1014_v44 }
 0x176   : > { %1539 = vmatmul.mubr.msk.f32.gmra.mrb[36].mxu0 %vm780_vm0, %v1024_v45 }
 0x177   : > { %1191 = vmatprep.mubr.f32.mxu0 %v1867_v39 }
 0x17a   : > { %1540 = vmatmul.mubr.msk.f32.gmra.mrb[38].mxu0 %vm780_vm0, %v1025_v46 }
 0x17b   : > { %1197 = vmatprep.mubr.f32.mxu0 %v1867_v39 }
 0x17e   : > { %1541 = vmatmul.mubr.msk.f32.gmra.mrb[40].mxu0 %vm780_vm0, %v1026_v47 }
 0x17f   : > { %1203 = vmatprep.mubr.f32.mxu0 %v1867_v39 }
 0x182   : > { %1542 = vmatmul.mubr.msk.f32.gmra.mrb[42].mxu0 %vm780_vm0, %v1027_v48 }
 0x183   : > { %1314 = vmatprep.mubr.f32.mxu0 %v1867_v39 }
 0x186   : > { %1543 = vmatmul.mubr.msk.f32.vlgmr.msra.gmra.mrb[18].mxu0 %vm1210_vm1, %v1002_v49 }
 0x187   : > { %1320 = vmatprep.mubr.f32.mxu0 %v1867_v39 }
 0x18a   : > { %1544 = vmatmul.mubr.msk.f32.gmra.mrb[20].mxu0 %vm1210_vm1, %v1003_v50 }
 0x18b   : > { %1326 = vmatprep.mubr.f32.mxu0 %v1867_v39 }
 0x18e   : > { %1545 = vmatmul.mubr.msk.f32.gmra.mrb[22].mxu0 %vm1210_vm1, %v1004_v51 }
 0x211   : > { %v997_v52 = vpop.f32.mrb[26].mxu1 }
 0x212   : > { %v999_v53 = vpop.f32.mrb[27].mxu1  ;;  %v998_v2 = vadd.f32 %v997_v52, %v924_v62 }
 0x213   : > { %v1000_v3 = vadd.f32 %v999_v53, %v928_v63 }
 0x214   : > { %v2812_v7 = vrot.slane %v998_v2, %v923_v58 }
 0x215   : > { %v2821_v10 = vrot.slane %v1000_v3, %v923_v58 }
 0x221   : > { %v1334_v55 = vpop.f32.mrb[28].mxu1 }
 0x222   : > { %v1336_v57 = vpop.f32.mrb[29].mxu1 }
 0x227   : > { %v1340_v39 = vpop.f32.mrb[30].mxu1 }
 0x228   : > { %v1342_v61 = vpop.f32.mrb[31].mxu1 }
 0x22b   : > { %v1346_v0 = vpop.f32.mrb[32].mxu1 }
 0x22c   : > { %v1348_v1 = vpop.f32.mrb[33].mxu1 }
 0x22f   : > { %v1352_v4 = vpop.f32.mrb[34].mxu1 }
 0x230   : > { %v1354_v5 = vpop.f32.mrb[35].mxu1 }
 0x231   : > { %v1151_v6 = vpop.f32.mrb[24].mxu0 }
 0x232   : > { %v1335_v8 = vadd.f32 %v1334_v55, %v1151_v6  ;;  %v1153_v9 = vpop.f32.mrb[25].mxu0 }
 0x233   : > { %v1337_v11 = vadd.f32 %v1336_v57, %v1153_v9  ;;  %v1358_v12 = vpop.f32.mrb[36].mxu1 }
 0x234   : > { %v1407_v13 = vadd.f32 %v2812_v7, %v1335_v8  ;;  %v1360_v14 = vpop.f32.mrb[37].mxu1 }
 0x235   : > { %v1408_v15 = vadd.f32 %v2821_v10, %v1337_v11  ;;  %v1157_v16 = vpop.f32.mrb[26].mxu0 }
 0x236   : > { %1433 = vst [vmem:[%s2819_s19 + $0x30] sm:$0xff] %v1407_v13  ;;  %v1341_v17 = vadd.f32 %v1340_v39, %v1157_v16  ;;  %v1159_v18 = vpop.f32.mrb[27].mxu0 }
 0x237   : > { %1434 = vst [vmem:[%s2819_s19 + $0x38] sm:$0xff] %v1408_v15  ;;  %v1343_v19 = vadd.f32 %v1342_v61, %v1159_v18  ;;  %v1364_v20 = vpop.f32.mrb[38].mxu1 }
 0x238   : > { %v1409_v21 = vadd.f32 %v2812_v7, %v1341_v17  ;;  %v1366_v22 = vpop.f32.mrb[39].mxu1 }
 0x239   : > { %v1410_v24 = vadd.f32 %v2821_v10, %v1343_v19  ;;  %v1163_v25 = vpop.f32.mrb[28].mxu0 }
 0x23a   : > { %1435 = vst [vmem:[%s2819_s19 + $0x40] sm:$0xff] %v1409_v21  ;;  %v1347_v26 = vadd.f32 %v1346_v0, %v1163_v25  ;;  %v1165_v23 = vpop.f32.mrb[29].mxu0 }
 0x23b   : > { %1436 = vst [vmem:[%s2819_s19 + $0x48] sm:$0xff] %v1410_v24  ;;  %v1349_v27 = vadd.f32 %v1348_v1, %v1165_v23  ;;  %v1370_v28 = vpop.f32.mrb[40].mxu1 }
 0x23c   : > { %v1411_v29 = vadd.f32 %v2812_v7, %v1347_v26  ;;  %v1372_v30 = vpop.f32.mrb[41].mxu1 }
 0x23d   : > { %v1412_v31 = vadd.f32 %v2821_v10, %v1349_v27  ;;  %v1169_v32 = vpop.f32.mrb[30].mxu0 }
 0x23e   : > { %1437 = vst [vmem:[%s2819_s19 + $0x50] sm:$0xff] %v1411_v29  ;;  %v1353_v33 = vadd.f32 %v1352_v4, %v1169_v32  ;;  %v1171_v34 = vpop.f32.mrb[31].mxu0 }
 0x23f   : > { %1438 = vst [vmem:[%s2819_s19 + $0x58] sm:$0xff] %v1412_v31  ;;  %v1355_v36 = vadd.f32 %v1354_v5, %v1171_v34  ;;  %v1376_v35 = vpop.f32.mrb[42].mxu1 }
 0x240   : > { %v1413_v38 = vadd.f32 %v2812_v7, %v1353_v33  ;;  %v1378_v40 = vpop.f32.mrb[43].mxu1 }
 0x241   : > { %v1414_v37 = vadd.f32 %v2821_v10, %v1355_v36  ;;  %v1175_v41 = vpop.f32.mrb[32].mxu0 }
 0x242   : > { %1439 = vst [vmem:[%s2819_s19 + $0x60] sm:$0xff] %v1413_v38  ;;  %v1359_v42 = vadd.f32 %v1358_v12, %v1175_v41  ;;  %v1177_v43 = vpop.f32.mrb[33].mxu0 }
 0x243   : > { %1440 = vst [vmem:[%s2819_s19 + $0x68] sm:$0xff] %v1414_v37  ;;  %v1361_v44 = vadd.f32 %v1360_v14, %v1177_v43  ;;  %v1382_v45 = vpop.f32.mrb[44].mxu1 }
 0x244   : > { %v1415_v46 = vadd.f32 %v2812_v7, %v1359_v42  ;;  %v1384_v47 = vpop.f32.mrb[45].mxu1 }
 0x245   : > { %v1416_v48 = vadd.f32 %v2821_v10, %v1361_v44  ;;  %v1181_v49 = vpop.f32.mrb[34].mxu0 }
 0x246   : > { %1441 = vst [vmem:[%s2819_s19 + $0x70] sm:$0xff] %v1415_v46  ;;  %v1365_v50 = vadd.f32 %v1364_v20, %v1181_v49  ;;  %v1183_v51 = vpop.f32.mrb[35].mxu0 }
 0x247   : > { %1442 = vst [vmem:[%s2819_s19 + $0x78] sm:$0xff] %v1416_v48  ;;  %v1367_v52 = vadd.f32 %v1366_v22, %v1183_v51  ;;  %v1388_v53 = vpop.f32.mrb[46].mxu1 }
 0x248   : > { %v1417_v54 = vadd.f32 %v2812_v7, %v1365_v50  ;;  %v1390_v55 = vpop.f32.mrb[47].mxu1 }
 0x249   : > { %v1418_v56 = vadd.f32 %v2821_v10, %v1367_v52  ;;  %v1187_v57 = vpop.f32.mrb[36].mxu0 }
 0x24a   : > { %1443 = vst [vmem:[%s2819_s19 + $0x80] sm:$0xff] %v1417_v54  ;;  %v1371_v58 = vadd.f32 %v1370_v28, %v1187_v57  ;;  %v1189_v59 = vpop.f32.mrb[37].mxu0 }
 0x24b   : > { %1444 = vst [vmem:[%s2819_s19 + $0x88] sm:$0xff] %v1418_v56  ;;  %v1373_v60 = vadd.f32 %v1372_v30, %v1189_v59 }
 0x24c   : > { %v1419_v39 = vadd.f32 %v2812_v7, %v1371_v58 }
 0x24d   : > { %v1420_v61 = vadd.f32 %v2821_v10, %v1373_v60  ;;  %v1193_v62 = vpop.f32.mrb[38].mxu0 }
 0x24e   : > { %1445 = vst [vmem:[%s2819_s19 + $0x90] sm:$0xff] %v1419_v39  ;;  %v1377_v63 = vadd.f32 %v1376_v35, %v1193_v62  ;;  %v1195_v0 = vpop.f32.mrb[39].mxu0 }
 0x24f   : > { %1446 = vst [vmem:[%s2819_s19 + $0x98] sm:$0xff] %v1420_v61  ;;  %v1379_v1 = vadd.f32 %v1378_v40, %v1195_v0 }
 0x250   : > { %v1421_v2 = vadd.f32 %v2812_v7, %v1377_v63 }
 0x251   : > { %v1422_v3 = vadd.f32 %v2821_v10, %v1379_v1  ;;  %v1199_v4 = vpop.f32.mrb[40].mxu0 }
 0x252   : > { %1447 = vst [vmem:[%s2819_s19 + $0xa0] sm:$0xff] %v1421_v2  ;;  %v1383_v5 = vadd.f32 %v1382_v45, %v1199_v4  ;;  %v1201_v6 = vpop.f32.mrb[41].mxu0 }
 0x253   : > { %1448 = vst [vmem:[%s2819_s19 + $0xa8] sm:$0xff] %v1422_v3  ;;  %v1385_v8 = vadd.f32 %v1384_v47, %v1201_v6 }
 0x254   : > { %v1423_v9 = vadd.f32 %v2812_v7, %v1383_v5 }
 0x255   : > { %v1424_v11 = vadd.f32 %v2821_v10, %v1385_v8  ;;  %v1205_v12 = vpop.f32.mrb[42].mxu0 }
 0x256   : > { %1449 = vst [vmem:[%s2819_s19 + $0xb0] sm:$0xff] %v1423_v9  ;;  %v1389_v13 = vadd.f32 %v1388_v53, %v1205_v12  ;;  %v1207_v14 = vpop.f32.mrb[43].mxu0 }
 0x257   : > { %1450 = vst [vmem:[%s2819_s19 + $0xb8] sm:$0xff] %v1424_v11  ;;  %v1391_v15 = vadd.f32 %v1390_v55, %v1207_v14 }
 0x258   : > { %v1425_v16 = vadd.f32 %v2812_v7, %v1389_v13 }
 0x259   : > { %v1426_v17 = vadd.f32 %v2821_v10, %v1391_v15  ;;  %v1316_v18 = vpop.f32.mrb[18].mxu0 }
 0x25a   : > { %1451 = vst [vmem:[%s2819_s19 + $0xc0] sm:$0xff] %v1425_v16  ;;  %v1401_v19 = vadd.f32 %v2812_v7, %v1316_v18  ;;  %v1318_v20 = vpop.f32.mrb[19].mxu0 }
 0x25b   : > { %1452 = vst [vmem:[%s2819_s19 + $0xc8] sm:$0xff] %v1426_v17  ;;  %v1402_v21 = vadd.f32 %v2821_v10, %v1318_v20 }
 0x25c   : > { %1427 = vst [vmem:[%s2819_s19] sm:$0xff] %v1401_v19 }
 0x25d   : > { %1428 = vst [vmem:[%s2819_s19 + $0x8] sm:$0xff] %v1402_v21  ;;  %v1322_v22 = vpop.f32.mrb[20].mxu0 }
 0x25e   : > { %v1403_v24 = vadd.f32 %v2812_v7, %v1322_v22  ;;  %v1324_v25 = vpop.f32.mrb[21].mxu0 }
 0x25f   : > { %v1404_v26 = vadd.f32 %v2821_v10, %v1324_v25 }
 0x260   : > { %1429 = vst [vmem:[%s2819_s19 + $0x10] sm:$0xff] %v1403_v24 }
 0x261   : > { %1430 = vst [vmem:[%s2819_s19 + $0x18] sm:$0xff] %v1404_v26  ;;  %v1328_v23 = vpop.f32.mrb[22].mxu0 }
 0x262   : > { %v1405_v27 = vadd.f32 %v2812_v7, %v1328_v23  ;;  %v1330_v28 = vpop.f32.mrb[23].mxu0 }
 0x263   : > { %v1406_v29 = vadd.f32 %v2821_v10, %v1330_v28 }
 0x264   : > { %1431 = vst [vmem:[%s2819_s19 + $0x20] sm:$0xff] %v1405_v27 }
 0x265   : > { %1432 = vst [vmem:[%s2819_s19 + $0x28] sm:$0xff] %v1406_v29 }
 0x266 PF: > { %s19_s30 = sadd.s32 1, %s1865_s30  }
 0x267   : > { %p16_p4 = scmp.ge.s32.totalorder %s19_s30, 4  }
 0x269   :  { %18 = sbr.rel (!%p16_p4) target bundleno = 1 (0x1), region = 89 }

</bundles_post_ra>
